<compile_context>
chip_gen: v7x
topology: tpu7x:2x2x1
jax: 0.10.0
libtpu: 0.0.40
codegen_flags: <defaults>
</compile_context>

<pallas_src>
import numpy as np
import jax
import jax.numpy as jnp
from jax.experimental import pallas as pl
from jax.experimental.pallas import tpu as pltpu

IMAGE_SIZE = 32
LANE_W = 128  # lane-dense reshape width (32*32 = 8 * 128 = one f32 vreg)


# ----------------------------- Pallas kernel ------------------------------ #
def _raster_loss_kernel(coef_ref, px_ref, py_ref, ref_ref, loss_ref):
    # coef_ref: SMEM [9*F]   per-face oriented edge coefficients
    #           layout: face f, edge e -> [A, B, C] at coef[9*f + 3*e + {0,1,2}]
    # px_ref :  VMEM [8,128] NDC x of each pixel center (lane-dense layout)
    # py_ref :  VMEM [8,128] NDC y of each pixel center (lane-dense layout)
    # ref_ref:  VMEM [8,128] reference image (same lane-dense layout)
    # loss_ref: SMEM [1,1]   scalar loss
    px = px_ref[...]
    py = py_ref[...]

    n_faces = coef_ref.shape[0] // 9
    covered = jnp.zeros(px.shape, jnp.bool_)
    # Static unroll: n_faces is a Python int (20), so the LLO scheduler sees
    # every face's scalar loads + FMAs and can interleave them freely.
    for f in range(n_faces):
        base = 9 * f
        e0 = coef_ref[base + 0] * px + coef_ref[base + 1] * py + coef_ref[base + 2]
        e1 = coef_ref[base + 3] * px + coef_ref[base + 4] * py + coef_ref[base + 5]
        e2 = coef_ref[base + 6] * px + coef_ref[base + 7] * py + coef_ref[base + 8]
        inside = (e0 >= 0.0) & (e1 >= 0.0) & (e2 >= 0.0)
        covered = covered | inside

    sil = covered.astype(jnp.float32)
    diff = sil - ref_ref[...]
    loss_ref[0, 0] = jnp.sum(diff * diff)


def render_silhouette_loss(face_verts_ndc, image_ref, image_size=IMAGE_SIZE):
    """face_verts_ndc: [F, 3, 2] projected xy per face; image_ref: [H, W]."""
    x = face_verts_ndc[:, :, 0]
    y = face_verts_ndc[:, :, 1]
    x0, x1, x2 = x[:, 0], x[:, 1], x[:, 2]
    y0, y1, y2 = y[:, 0], y[:, 1], y[:, 2]

    def edge(xa, ya, xb, yb):
        # E(p) = A*px + B*py + C ; E >= 0 on the interior side (after orient).
        a = -(yb - ya)
        b = xb - xa
        c = (yb - ya) * xa - (xb - xa) * ya
        return a, b, c

    a0, b0, c0 = edge(x0, y0, x1, y1)
    a1, b1, c1 = edge(x1, y1, x2, y2)
    a2, b2, c2 = edge(x2, y2, x0, y0)

    area = (x1 - x0) * (y2 - y0) - (x2 - x0) * (y1 - y0)
    s = jnp.sign(area)
    degen = (area == 0.0)[:, None]

    A = jnp.stack([a0, a1, a2], axis=1) * s[:, None]
    B = jnp.stack([b0, b1, b2], axis=1) * s[:, None]
    C = jnp.stack([c0, c1, c2], axis=1) * s[:, None]
    # Degenerate faces never cover any pixel.
    A = jnp.where(degen, 0.0, A)
    B = jnp.where(degen, 0.0, B)
    C = jnp.where(degen, -1.0, C)

    # Flat 1D SMEM layout: face-major, edge-major, [A, B, C] innermost.
    coef = jnp.stack([A, B, C], axis=-1).reshape(-1).astype(jnp.float32)

    # Precompute NDC pixel-center coordinates in the lane-dense (8,128)
    # layout. Row 0 is the top of the image (+y up); same convention as the
    # previous in-kernel iota version.
    h = w = image_size
    cols = jnp.arange(w, dtype=jnp.float32)
    rows = jnp.arange(h, dtype=jnp.float32)
    px_full = jnp.broadcast_to((2.0 * (cols[None, :] + 0.5) - w) / w, (h, w))
    py_full = jnp.broadcast_to((h - 2.0 * (rows[:, None] + 0.5)) / h, (h, w))

    total = h * w
    ld_rows = total // LANE_W                  # 32*32 / 128 = 8
    px = px_full.reshape(ld_rows, LANE_W)
    py = py_full.reshape(ld_rows, LANE_W)
    ref = image_ref.astype(jnp.float32).reshape(ld_rows, LANE_W)

    loss = pl.pallas_call(
        _raster_loss_kernel,
        out_shape=jax.ShapeDtypeStruct((1, 1), jnp.float32),
        in_specs=[
            pl.BlockSpec(memory_space=pltpu.MemorySpace.SMEM),
            pl.BlockSpec(memory_space=pltpu.MemorySpace.VMEM),
            pl.BlockSpec(memory_space=pltpu.MemorySpace.VMEM),
            pl.BlockSpec(memory_space=pltpu.MemorySpace.VMEM),
        ],
        out_specs=pl.BlockSpec(memory_space=pltpu.MemorySpace.SMEM),
    )(coef, px, py, ref)
    return loss[0, 0]


# ------------------------------ JAX glue ---------------------------------- #
def get_points_from_angles(distance, elevation, azimuth):
    e = jnp.deg2rad(jnp.float32(elevation))
    a = jnp.deg2rad(jnp.float32(azimuth))
    return jnp.stack([distance * jnp.cos(e) * jnp.sin(a),
                      distance * jnp.sin(e),
                      -distance * jnp.cos(e) * jnp.cos(a)])


def look_at(vertices, eye):
    at = jnp.zeros(3, jnp.float32)
    up = jnp.array([0.0, 1.0, 0.0], jnp.float32)
    z = at - eye
    z = z / jnp.linalg.norm(z)
    x = jnp.cross(up, z)
    x = x / jnp.linalg.norm(x)
    y = jnp.cross(z, x)
    y = y / jnp.linalg.norm(y)
    r = jnp.stack([x, y, z], axis=0)          # [3, 3]
    return (vertices - eye) @ r.T


def perspective(vertices, viewing_angle=30.0):
    width = jnp.tan(jnp.deg2rad(jnp.float32(viewing_angle)))
    z = vertices[:, 2]
    x = vertices[:, 0] / (z * width)
    y = vertices[:, 1] / (z * width)
    return jnp.stack([x, y, z], axis=1)


def normalize_vertices(v):
    v = v - (v.max(axis=0) + v.min(axis=0)) / 2.0
    return v / jnp.abs(v).max() * 0.5


class Args:
    texture_size = 2
    camera_distance = 2.732
    elevation = 30.0
    azimuth = 0.0
    image_size = IMAGE_SIZE


class Model:
    def __init__(self, vertices, faces, image_ref, args):
        self.args = args
        self.vertices = normalize_vertices(vertices)[None]          # [1, V, 3]
        self.faces = faces[None]                                     # [1, F, 3]
        # Buffer created as in the original module (unused in silhouette mode).
        self.textures = jnp.ones((1, faces.shape[0], args.texture_size,
                                  args.texture_size, args.texture_size, 3),
                                 jnp.float32)
        self.image_ref = image_ref[None]                             # [1, H, W]
        self.eye = None

    def forward(self):
        self.eye = get_points_from_angles(self.args.camera_distance,
                                          self.args.elevation,
                                          self.args.azimuth)
        v = self.vertices[0]                       # [V, 3]
        v_cam = look_at(v, self.eye)
        v_ndc = perspective(v_cam)                 # [V, 3]
        f = self.faces[0]                          # [F, 3] int32
        face_verts = v_ndc[f][:, :, :2]            # [F, 3, 2]
        # image: [1, H, W]; loss = sum((image - image_ref[None])**2) — the
        # batch-1 broadcast makes this identical to a sum over [H, W].
        return render_silhouette_loss(face_verts, self.image_ref[0],
                                      self.args.image_size)


# Deterministic synthetic mesh (icosahedron: 12 vertices, 20 faces) instead
# of loading an .obj file.
_PHI = (1.0 + 5.0 ** 0.5) / 2.0
ICO_VERTS = np.array([
    [-1, _PHI, 0], [1, _PHI, 0], [-1, -_PHI, 0], [1, -_PHI, 0],
    [0, -1, _PHI], [0, 1, _PHI], [0, -1, -_PHI], [0, 1, -_PHI],
    [_PHI, 0, -1], [_PHI, 0, 1], [-_PHI, 0, -1], [-_PHI, 0, 1],
], dtype=np.float32)
ICO_FACES = np.array([
    [0, 11, 5], [0, 5, 1], [0, 1, 7], [0, 7, 10], [0, 10, 11],
    [1, 5, 9], [5, 11, 4], [11, 10, 2], [10, 7, 6], [7, 1, 8],
    [3, 9, 4], [3, 4, 2], [3, 2, 6], [3, 6, 8], [3, 8, 9],
    [4, 9, 5], [2, 4, 11], [6, 2, 10], [8, 6, 7], [9, 8, 1],
], dtype=np.int32)


if __name__ == "__main__":
    key = jax.random.PRNGKey(0)
    k_ref, k_jit = jax.random.split(key)

    verts = jnp.asarray(ICO_VERTS)
    verts = verts + 0.01 * jax.random.normal(k_jit, verts.shape,
                                             dtype=jnp.float32)
    faces = jnp.asarray(ICO_FACES)
    # Synthetic reference image in [0, 1] (stands in for imread(...).mean/255).
    image_ref = jax.random.uniform(k_ref, (IMAGE_SIZE, IMAGE_SIZE),
                                   dtype=jnp.float32)

    model = Model(verts, faces, image_ref, Args())
    loss = model.forward()
    jax.block_until_ready(loss)
    print("KERNEL_OK")
</pallas_src>

<mosaic_0001>
module attributes {stable_mosaic.version = 11 : i64} {
  func.func @_raster_loss_kernel(%arg0: memref<180xf32, #tpu.memory_space<smem>>, %arg1: memref<8x128xf32, #tpu.memory_space<vmem>>, %arg2: memref<8x128xf32, #tpu.memory_space<vmem>>, %arg3: memref<8x128xf32, #tpu.memory_space<vmem>>, %arg4: memref<1x1xf32, #tpu.memory_space<smem>>) attributes {dimension_semantics = [], scalar_prefetch = 0 : i64, scratch_operands = 0 : i64, tpu.core_type = #tpu.core_type<tc>} {
    %c0 = arith.constant 0 : index
    %c0_0 = arith.constant 0 : index
    %0 = vector.load %arg1[%c0, %c0_0] : memref<8x128xf32, #tpu.memory_space<vmem>>, vector<8x128xf32>
    %c0_1 = arith.constant 0 : index
    %c0_2 = arith.constant 0 : index
    %1 = vector.load %arg2[%c0_1, %c0_2] : memref<8x128xf32, #tpu.memory_space<vmem>>, vector<8x128xf32>
    %false = arith.constant false
    %2 = vector.broadcast %false : i1 to vector<8x128xi1>
    %c0_3 = arith.constant 0 : index
    %3 = memref.load %arg0[%c0_3] : memref<180xf32, #tpu.memory_space<smem>>
    %4 = vector.broadcast %3 : f32 to vector<8x128xf32>
    %5 = arith.mulf %4, %0 : vector<8x128xf32>
    %c1 = arith.constant 1 : index
    %6 = memref.load %arg0[%c1] : memref<180xf32, #tpu.memory_space<smem>>
    %7 = vector.broadcast %6 : f32 to vector<8x128xf32>
    %8 = arith.mulf %7, %1 : vector<8x128xf32>
    %9 = arith.addf %5, %8 : vector<8x128xf32>
    %c2 = arith.constant 2 : index
    %10 = memref.load %arg0[%c2] : memref<180xf32, #tpu.memory_space<smem>>
    %11 = vector.broadcast %10 : f32 to vector<8x128xf32>
    %12 = arith.addf %9, %11 : vector<8x128xf32>
    %c3 = arith.constant 3 : index
    %13 = memref.load %arg0[%c3] : memref<180xf32, #tpu.memory_space<smem>>
    %14 = vector.broadcast %13 : f32 to vector<8x128xf32>
    %15 = arith.mulf %14, %0 : vector<8x128xf32>
    %c4 = arith.constant 4 : index
    %16 = memref.load %arg0[%c4] : memref<180xf32, #tpu.memory_space<smem>>
    %17 = vector.broadcast %16 : f32 to vector<8x128xf32>
    %18 = arith.mulf %17, %1 : vector<8x128xf32>
    %19 = arith.addf %15, %18 : vector<8x128xf32>
    %c5 = arith.constant 5 : index
    %20 = memref.load %arg0[%c5] : memref<180xf32, #tpu.memory_space<smem>>
    %21 = vector.broadcast %20 : f32 to vector<8x128xf32>
    %22 = arith.addf %19, %21 : vector<8x128xf32>
    %c6 = arith.constant 6 : index
    %23 = memref.load %arg0[%c6] : memref<180xf32, #tpu.memory_space<smem>>
    %24 = vector.broadcast %23 : f32 to vector<8x128xf32>
    %25 = arith.mulf %24, %0 : vector<8x128xf32>
    %c7 = arith.constant 7 : index
    %26 = memref.load %arg0[%c7] : memref<180xf32, #tpu.memory_space<smem>>
    %27 = vector.broadcast %26 : f32 to vector<8x128xf32>
    %28 = arith.mulf %27, %1 : vector<8x128xf32>
    %29 = arith.addf %25, %28 : vector<8x128xf32>
    %c8 = arith.constant 8 : index
    %30 = memref.load %arg0[%c8] : memref<180xf32, #tpu.memory_space<smem>>
    %31 = vector.broadcast %30 : f32 to vector<8x128xf32>
    %32 = arith.addf %29, %31 : vector<8x128xf32>
    %cst = arith.constant 0.000000e+00 : f32
    %33 = vector.broadcast %cst : f32 to vector<8x128xf32>
    %34 = arith.cmpf oge, %12, %33 : vector<8x128xf32>
    %cst_4 = arith.constant 0.000000e+00 : f32
    %35 = vector.broadcast %cst_4 : f32 to vector<8x128xf32>
    %36 = arith.cmpf oge, %22, %35 : vector<8x128xf32>
    %37 = arith.andi %34, %36 : vector<8x128xi1>
    %cst_5 = arith.constant 0.000000e+00 : f32
    %38 = vector.broadcast %cst_5 : f32 to vector<8x128xf32>
    %39 = arith.cmpf oge, %32, %38 : vector<8x128xf32>
    %40 = arith.andi %37, %39 : vector<8x128xi1>
    %41 = arith.ori %2, %40 : vector<8x128xi1>
    %c9 = arith.constant 9 : index
    %42 = memref.load %arg0[%c9] : memref<180xf32, #tpu.memory_space<smem>>
    %43 = vector.broadcast %42 : f32 to vector<8x128xf32>
    %44 = arith.mulf %43, %0 : vector<8x128xf32>
    %c10 = arith.constant 10 : index
    %45 = memref.load %arg0[%c10] : memref<180xf32, #tpu.memory_space<smem>>
    %46 = vector.broadcast %45 : f32 to vector<8x128xf32>
    %47 = arith.mulf %46, %1 : vector<8x128xf32>
    %48 = arith.addf %44, %47 : vector<8x128xf32>
    %c11 = arith.constant 11 : index
    %49 = memref.load %arg0[%c11] : memref<180xf32, #tpu.memory_space<smem>>
    %50 = vector.broadcast %49 : f32 to vector<8x128xf32>
    %51 = arith.addf %48, %50 : vector<8x128xf32>
    %c12 = arith.constant 12 : index
    %52 = memref.load %arg0[%c12] : memref<180xf32, #tpu.memory_space<smem>>
    %53 = vector.broadcast %52 : f32 to vector<8x128xf32>
    %54 = arith.mulf %53, %0 : vector<8x128xf32>
    %c13 = arith.constant 13 : index
    %55 = memref.load %arg0[%c13] : memref<180xf32, #tpu.memory_space<smem>>
    %56 = vector.broadcast %55 : f32 to vector<8x128xf32>
    %57 = arith.mulf %56, %1 : vector<8x128xf32>
    %58 = arith.addf %54, %57 : vector<8x128xf32>
    %c14 = arith.constant 14 : index
    %59 = memref.load %arg0[%c14] : memref<180xf32, #tpu.memory_space<smem>>
    %60 = vector.broadcast %59 : f32 to vector<8x128xf32>
    %61 = arith.addf %58, %60 : vector<8x128xf32>
    %c15 = arith.constant 15 : index
    %62 = memref.load %arg0[%c15] : memref<180xf32, #tpu.memory_space<smem>>
    %63 = vector.broadcast %62 : f32 to vector<8x128xf32>
    %64 = arith.mulf %63, %0 : vector<8x128xf32>
    %c16 = arith.constant 16 : index
    %65 = memref.load %arg0[%c16] : memref<180xf32, #tpu.memory_space<smem>>
    %66 = vector.broadcast %65 : f32 to vector<8x128xf32>
    %67 = arith.mulf %66, %1 : vector<8x128xf32>
    %68 = arith.addf %64, %67 : vector<8x128xf32>
    %c17 = arith.constant 17 : index
    %69 = memref.load %arg0[%c17] : memref<180xf32, #tpu.memory_space<smem>>
    %70 = vector.broadcast %69 : f32 to vector<8x128xf32>
    %71 = arith.addf %68, %70 : vector<8x128xf32>
    %cst_6 = arith.constant 0.000000e+00 : f32
    %72 = vector.broadcast %cst_6 : f32 to vector<8x128xf32>
    %73 = arith.cmpf oge, %51, %72 : vector<8x128xf32>
    %cst_7 = arith.constant 0.000000e+00 : f32
    %74 = vector.broadcast %cst_7 : f32 to vector<8x128xf32>
    %75 = arith.cmpf oge, %61, %74 : vector<8x128xf32>
    %76 = arith.andi %73, %75 : vector<8x128xi1>
    %cst_8 = arith.constant 0.000000e+00 : f32
    %77 = vector.broadcast %cst_8 : f32 to vector<8x128xf32>
    %78 = arith.cmpf oge, %71, %77 : vector<8x128xf32>
    %79 = arith.andi %76, %78 : vector<8x128xi1>
    %80 = arith.ori %41, %79 : vector<8x128xi1>
    %c18 = arith.constant 18 : index
    %81 = memref.load %arg0[%c18] : memref<180xf32, #tpu.memory_space<smem>>
    %82 = vector.broadcast %81 : f32 to vector<8x128xf32>
    %83 = arith.mulf %82, %0 : vector<8x128xf32>
    %c19 = arith.constant 19 : index
    %84 = memref.load %arg0[%c19] : memref<180xf32, #tpu.memory_space<smem>>
    %85 = vector.broadcast %84 : f32 to vector<8x128xf32>
    %86 = arith.mulf %85, %1 : vector<8x128xf32>
    %87 = arith.addf %83, %86 : vector<8x128xf32>
    %c20 = arith.constant 20 : index
    %88 = memref.load %arg0[%c20] : memref<180xf32, #tpu.memory_space<smem>>
    %89 = vector.broadcast %88 : f32 to vector<8x128xf32>
    %90 = arith.addf %87, %89 : vector<8x128xf32>
    %c21 = arith.constant 21 : index
    %91 = memref.load %arg0[%c21] : memref<180xf32, #tpu.memory_space<smem>>
    %92 = vector.broadcast %91 : f32 to vector<8x128xf32>
    %93 = arith.mulf %92, %0 : vector<8x128xf32>
    %c22 = arith.constant 22 : index
    %94 = memref.load %arg0[%c22] : memref<180xf32, #tpu.memory_space<smem>>
    %95 = vector.broadcast %94 : f32 to vector<8x128xf32>
    %96 = arith.mulf %95, %1 : vector<8x128xf32>
    %97 = arith.addf %93, %96 : vector<8x128xf32>
    %c23 = arith.constant 23 : index
    %98 = memref.load %arg0[%c23] : memref<180xf32, #tpu.memory_space<smem>>
    %99 = vector.broadcast %98 : f32 to vector<8x128xf32>
    %100 = arith.addf %97, %99 : vector<8x128xf32>
    %c24 = arith.constant 24 : index
    %101 = memref.load %arg0[%c24] : memref<180xf32, #tpu.memory_space<smem>>
    %102 = vector.broadcast %101 : f32 to vector<8x128xf32>
    %103 = arith.mulf %102, %0 : vector<8x128xf32>
    %c25 = arith.constant 25 : index
    %104 = memref.load %arg0[%c25] : memref<180xf32, #tpu.memory_space<smem>>
    %105 = vector.broadcast %104 : f32 to vector<8x128xf32>
    %106 = arith.mulf %105, %1 : vector<8x128xf32>
    %107 = arith.addf %103, %106 : vector<8x128xf32>
    %c26 = arith.constant 26 : index
    %108 = memref.load %arg0[%c26] : memref<180xf32, #tpu.memory_space<smem>>
    %109 = vector.broadcast %108 : f32 to vector<8x128xf32>
    %110 = arith.addf %107, %109 : vector<8x128xf32>
    %cst_9 = arith.constant 0.000000e+00 : f32
    %111 = vector.broadcast %cst_9 : f32 to vector<8x128xf32>
    %112 = arith.cmpf oge, %90, %111 : vector<8x128xf32>
    %cst_10 = arith.constant 0.000000e+00 : f32
    %113 = vector.broadcast %cst_10 : f32 to vector<8x128xf32>
    %114 = arith.cmpf oge, %100, %113 : vector<8x128xf32>
    %115 = arith.andi %112, %114 : vector<8x128xi1>
    %cst_11 = arith.constant 0.000000e+00 : f32
    %116 = vector.broadcast %cst_11 : f32 to vector<8x128xf32>
    %117 = arith.cmpf oge, %110, %116 : vector<8x128xf32>
    %118 = arith.andi %115, %117 : vector<8x128xi1>
    %119 = arith.ori %80, %118 : vector<8x128xi1>
    %c27 = arith.constant 27 : index
    %120 = memref.load %arg0[%c27] : memref<180xf32, #tpu.memory_space<smem>>
    %121 = vector.broadcast %120 : f32 to vector<8x128xf32>
    %122 = arith.mulf %121, %0 : vector<8x128xf32>
    %c28 = arith.constant 28 : index
    %123 = memref.load %arg0[%c28] : memref<180xf32, #tpu.memory_space<smem>>
    %124 = vector.broadcast %123 : f32 to vector<8x128xf32>
    %125 = arith.mulf %124, %1 : vector<8x128xf32>
    %126 = arith.addf %122, %125 : vector<8x128xf32>
    %c29 = arith.constant 29 : index
    %127 = memref.load %arg0[%c29] : memref<180xf32, #tpu.memory_space<smem>>
    %128 = vector.broadcast %127 : f32 to vector<8x128xf32>
    %129 = arith.addf %126, %128 : vector<8x128xf32>
    %c30 = arith.constant 30 : index
    %130 = memref.load %arg0[%c30] : memref<180xf32, #tpu.memory_space<smem>>
    %131 = vector.broadcast %130 : f32 to vector<8x128xf32>
    %132 = arith.mulf %131, %0 : vector<8x128xf32>
    %c31 = arith.constant 31 : index
    %133 = memref.load %arg0[%c31] : memref<180xf32, #tpu.memory_space<smem>>
    %134 = vector.broadcast %133 : f32 to vector<8x128xf32>
    %135 = arith.mulf %134, %1 : vector<8x128xf32>
    %136 = arith.addf %132, %135 : vector<8x128xf32>
    %c32 = arith.constant 32 : index
    %137 = memref.load %arg0[%c32] : memref<180xf32, #tpu.memory_space<smem>>
    %138 = vector.broadcast %137 : f32 to vector<8x128xf32>
    %139 = arith.addf %136, %138 : vector<8x128xf32>
    %c33 = arith.constant 33 : index
    %140 = memref.load %arg0[%c33] : memref<180xf32, #tpu.memory_space<smem>>
    %141 = vector.broadcast %140 : f32 to vector<8x128xf32>
    %142 = arith.mulf %141, %0 : vector<8x128xf32>
    %c34 = arith.constant 34 : index
    %143 = memref.load %arg0[%c34] : memref<180xf32, #tpu.memory_space<smem>>
    %144 = vector.broadcast %143 : f32 to vector<8x128xf32>
    %145 = arith.mulf %144, %1 : vector<8x128xf32>
    %146 = arith.addf %142, %145 : vector<8x128xf32>
    %c35 = arith.constant 35 : index
    %147 = memref.load %arg0[%c35] : memref<180xf32, #tpu.memory_space<smem>>
    %148 = vector.broadcast %147 : f32 to vector<8x128xf32>
    %149 = arith.addf %146, %148 : vector<8x128xf32>
    %cst_12 = arith.constant 0.000000e+00 : f32
    %150 = vector.broadcast %cst_12 : f32 to vector<8x128xf32>
    %151 = arith.cmpf oge, %129, %150 : vector<8x128xf32>
    %cst_13 = arith.constant 0.000000e+00 : f32
    %152 = vector.broadcast %cst_13 : f32 to vector<8x128xf32>
    %153 = arith.cmpf oge, %139, %152 : vector<8x128xf32>
    %154 = arith.andi %151, %153 : vector<8x128xi1>
    %cst_14 = arith.constant 0.000000e+00 : f32
    %155 = vector.broadcast %cst_14 : f32 to vector<8x128xf32>
    %156 = arith.cmpf oge, %149, %155 : vector<8x128xf32>
    %157 = arith.andi %154, %156 : vector<8x128xi1>
    %158 = arith.ori %119, %157 : vector<8x128xi1>
    %c36 = arith.constant 36 : index
    %159 = memref.load %arg0[%c36] : memref<180xf32, #tpu.memory_space<smem>>
    %160 = vector.broadcast %159 : f32 to vector<8x128xf32>
    %161 = arith.mulf %160, %0 : vector<8x128xf32>
    %c37 = arith.constant 37 : index
    %162 = memref.load %arg0[%c37] : memref<180xf32, #tpu.memory_space<smem>>
    %163 = vector.broadcast %162 : f32 to vector<8x128xf32>
    %164 = arith.mulf %163, %1 : vector<8x128xf32>
    %165 = arith.addf %161, %164 : vector<8x128xf32>
    %c38 = arith.constant 38 : index
    %166 = memref.load %arg0[%c38] : memref<180xf32, #tpu.memory_space<smem>>
    %167 = vector.broadcast %166 : f32 to vector<8x128xf32>
    %168 = arith.addf %165, %167 : vector<8x128xf32>
    %c39 = arith.constant 39 : index
    %169 = memref.load %arg0[%c39] : memref<180xf32, #tpu.memory_space<smem>>
    %170 = vector.broadcast %169 : f32 to vector<8x128xf32>
    %171 = arith.mulf %170, %0 : vector<8x128xf32>
    %c40 = arith.constant 40 : index
    %172 = memref.load %arg0[%c40] : memref<180xf32, #tpu.memory_space<smem>>
    %173 = vector.broadcast %172 : f32 to vector<8x128xf32>
    %174 = arith.mulf %173, %1 : vector<8x128xf32>
    %175 = arith.addf %171, %174 : vector<8x128xf32>
    %c41 = arith.constant 41 : index
    %176 = memref.load %arg0[%c41] : memref<180xf32, #tpu.memory_space<smem>>
    %177 = vector.broadcast %176 : f32 to vector<8x128xf32>
    %178 = arith.addf %175, %177 : vector<8x128xf32>
    %c42 = arith.constant 42 : index
    %179 = memref.load %arg0[%c42] : memref<180xf32, #tpu.memory_space<smem>>
    %180 = vector.broadcast %179 : f32 to vector<8x128xf32>
    %181 = arith.mulf %180, %0 : vector<8x128xf32>
    %c43 = arith.constant 43 : index
    %182 = memref.load %arg0[%c43] : memref<180xf32, #tpu.memory_space<smem>>
    %183 = vector.broadcast %182 : f32 to vector<8x128xf32>
    %184 = arith.mulf %183, %1 : vector<8x128xf32>
    %185 = arith.addf %181, %184 : vector<8x128xf32>
    %c44 = arith.constant 44 : index
    %186 = memref.load %arg0[%c44] : memref<180xf32, #tpu.memory_space<smem>>
    %187 = vector.broadcast %186 : f32 to vector<8x128xf32>
    %188 = arith.addf %185, %187 : vector<8x128xf32>
    %cst_15 = arith.constant 0.000000e+00 : f32
    %189 = vector.broadcast %cst_15 : f32 to vector<8x128xf32>
    %190 = arith.cmpf oge, %168, %189 : vector<8x128xf32>
    %cst_16 = arith.constant 0.000000e+00 : f32
    %191 = vector.broadcast %cst_16 : f32 to vector<8x128xf32>
    %192 = arith.cmpf oge, %178, %191 : vector<8x128xf32>
    %193 = arith.andi %190, %192 : vector<8x128xi1>
    %cst_17 = arith.constant 0.000000e+00 : f32
    %194 = vector.broadcast %cst_17 : f32 to vector<8x128xf32>
    %195 = arith.cmpf oge, %188, %194 : vector<8x128xf32>
    %196 = arith.andi %193, %195 : vector<8x128xi1>
    %197 = arith.ori %158, %196 : vector<8x128xi1>
    %c45 = arith.constant 45 : index
    %198 = memref.load %arg0[%c45] : memref<180xf32, #tpu.memory_space<smem>>
    %199 = vector.broadcast %198 : f32 to vector<8x128xf32>
    %200 = arith.mulf %199, %0 : vector<8x128xf32>
    %c46 = arith.constant 46 : index
    %201 = memref.load %arg0[%c46] : memref<180xf32, #tpu.memory_space<smem>>
    %202 = vector.broadcast %201 : f32 to vector<8x128xf32>
    %203 = arith.mulf %202, %1 : vector<8x128xf32>
    %204 = arith.addf %200, %203 : vector<8x128xf32>
    %c47 = arith.constant 47 : index
    %205 = memref.load %arg0[%c47] : memref<180xf32, #tpu.memory_space<smem>>
    %206 = vector.broadcast %205 : f32 to vector<8x128xf32>
    %207 = arith.addf %204, %206 : vector<8x128xf32>
    %c48 = arith.constant 48 : index
    %208 = memref.load %arg0[%c48] : memref<180xf32, #tpu.memory_space<smem>>
    %209 = vector.broadcast %208 : f32 to vector<8x128xf32>
    %210 = arith.mulf %209, %0 : vector<8x128xf32>
    %c49 = arith.constant 49 : index
    %211 = memref.load %arg0[%c49] : memref<180xf32, #tpu.memory_space<smem>>
    %212 = vector.broadcast %211 : f32 to vector<8x128xf32>
    %213 = arith.mulf %212, %1 : vector<8x128xf32>
    %214 = arith.addf %210, %213 : vector<8x128xf32>
    %c50 = arith.constant 50 : index
    %215 = memref.load %arg0[%c50] : memref<180xf32, #tpu.memory_space<smem>>
    %216 = vector.broadcast %215 : f32 to vector<8x128xf32>
    %217 = arith.addf %214, %216 : vector<8x128xf32>
    %c51 = arith.constant 51 : index
    %218 = memref.load %arg0[%c51] : memref<180xf32, #tpu.memory_space<smem>>
    %219 = vector.broadcast %218 : f32 to vector<8x128xf32>
    %220 = arith.mulf %219, %0 : vector<8x128xf32>
    %c52 = arith.constant 52 : index
    %221 = memref.load %arg0[%c52] : memref<180xf32, #tpu.memory_space<smem>>
    %222 = vector.broadcast %221 : f32 to vector<8x128xf32>
    %223 = arith.mulf %222, %1 : vector<8x128xf32>
    %224 = arith.addf %220, %223 : vector<8x128xf32>
    %c53 = arith.constant 53 : index
    %225 = memref.load %arg0[%c53] : memref<180xf32, #tpu.memory_space<smem>>
    %226 = vector.broadcast %225 : f32 to vector<8x128xf32>
    %227 = arith.addf %224, %226 : vector<8x128xf32>
    %cst_18 = arith.constant 0.000000e+00 : f32
    %228 = vector.broadcast %cst_18 : f32 to vector<8x128xf32>
    %229 = arith.cmpf oge, %207, %228 : vector<8x128xf32>
    %cst_19 = arith.constant 0.000000e+00 : f32
    %230 = vector.broadcast %cst_19 : f32 to vector<8x128xf32>
    %231 = arith.cmpf oge, %217, %230 : vector<8x128xf32>
    %232 = arith.andi %229, %231 : vector<8x128xi1>
    %cst_20 = arith.constant 0.000000e+00 : f32
    %233 = vector.broadcast %cst_20 : f32 to vector<8x128xf32>
    %234 = arith.cmpf oge, %227, %233 : vector<8x128xf32>
    %235 = arith.andi %232, %234 : vector<8x128xi1>
    %236 = arith.ori %197, %235 : vector<8x128xi1>
    %c54 = arith.constant 54 : index
    %237 = memref.load %arg0[%c54] : memref<180xf32, #tpu.memory_space<smem>>
    %238 = vector.broadcast %237 : f32 to vector<8x128xf32>
    %239 = arith.mulf %238, %0 : vector<8x128xf32>
    %c55 = arith.constant 55 : index
    %240 = memref.load %arg0[%c55] : memref<180xf32, #tpu.memory_space<smem>>
    %241 = vector.broadcast %240 : f32 to vector<8x128xf32>
    %242 = arith.mulf %241, %1 : vector<8x128xf32>
    %243 = arith.addf %239, %242 : vector<8x128xf32>
    %c56 = arith.constant 56 : index
    %244 = memref.load %arg0[%c56] : memref<180xf32, #tpu.memory_space<smem>>
    %245 = vector.broadcast %244 : f32 to vector<8x128xf32>
    %246 = arith.addf %243, %245 : vector<8x128xf32>
    %c57 = arith.constant 57 : index
    %247 = memref.load %arg0[%c57] : memref<180xf32, #tpu.memory_space<smem>>
    %248 = vector.broadcast %247 : f32 to vector<8x128xf32>
    %249 = arith.mulf %248, %0 : vector<8x128xf32>
    %c58 = arith.constant 58 : index
    %250 = memref.load %arg0[%c58] : memref<180xf32, #tpu.memory_space<smem>>
    %251 = vector.broadcast %250 : f32 to vector<8x128xf32>
    %252 = arith.mulf %251, %1 : vector<8x128xf32>
    %253 = arith.addf %249, %252 : vector<8x128xf32>
    %c59 = arith.constant 59 : index
    %254 = memref.load %arg0[%c59] : memref<180xf32, #tpu.memory_space<smem>>
    %255 = vector.broadcast %254 : f32 to vector<8x128xf32>
    %256 = arith.addf %253, %255 : vector<8x128xf32>
    %c60 = arith.constant 60 : index
    %257 = memref.load %arg0[%c60] : memref<180xf32, #tpu.memory_space<smem>>
    %258 = vector.broadcast %257 : f32 to vector<8x128xf32>
    %259 = arith.mulf %258, %0 : vector<8x128xf32>
    %c61 = arith.constant 61 : index
    %260 = memref.load %arg0[%c61] : memref<180xf32, #tpu.memory_space<smem>>
    %261 = vector.broadcast %260 : f32 to vector<8x128xf32>
    %262 = arith.mulf %261, %1 : vector<8x128xf32>
    %263 = arith.addf %259, %262 : vector<8x128xf32>
    %c62 = arith.constant 62 : index
    %264 = memref.load %arg0[%c62] : memref<180xf32, #tpu.memory_space<smem>>
    %265 = vector.broadcast %264 : f32 to vector<8x128xf32>
    %266 = arith.addf %263, %265 : vector<8x128xf32>
    %cst_21 = arith.constant 0.000000e+00 : f32
    %267 = vector.broadcast %cst_21 : f32 to vector<8x128xf32>
    %268 = arith.cmpf oge, %246, %267 : vector<8x128xf32>
    %cst_22 = arith.constant 0.000000e+00 : f32
    %269 = vector.broadcast %cst_22 : f32 to vector<8x128xf32>
    %270 = arith.cmpf oge, %256, %269 : vector<8x128xf32>
    %271 = arith.andi %268, %270 : vector<8x128xi1>
    %cst_23 = arith.constant 0.000000e+00 : f32
    %272 = vector.broadcast %cst_23 : f32 to vector<8x128xf32>
    %273 = arith.cmpf oge, %266, %272 : vector<8x128xf32>
    %274 = arith.andi %271, %273 : vector<8x128xi1>
    %275 = arith.ori %236, %274 : vector<8x128xi1>
    %c63 = arith.constant 63 : index
    %276 = memref.load %arg0[%c63] : memref<180xf32, #tpu.memory_space<smem>>
    %277 = vector.broadcast %276 : f32 to vector<8x128xf32>
    %278 = arith.mulf %277, %0 : vector<8x128xf32>
    %c64 = arith.constant 64 : index
    %279 = memref.load %arg0[%c64] : memref<180xf32, #tpu.memory_space<smem>>
    %280 = vector.broadcast %279 : f32 to vector<8x128xf32>
    %281 = arith.mulf %280, %1 : vector<8x128xf32>
    %282 = arith.addf %278, %281 : vector<8x128xf32>
    %c65 = arith.constant 65 : index
    %283 = memref.load %arg0[%c65] : memref<180xf32, #tpu.memory_space<smem>>
    %284 = vector.broadcast %283 : f32 to vector<8x128xf32>
    %285 = arith.addf %282, %284 : vector<8x128xf32>
    %c66 = arith.constant 66 : index
    %286 = memref.load %arg0[%c66] : memref<180xf32, #tpu.memory_space<smem>>
    %287 = vector.broadcast %286 : f32 to vector<8x128xf32>
    %288 = arith.mulf %287, %0 : vector<8x128xf32>
    %c67 = arith.constant 67 : index
    %289 = memref.load %arg0[%c67] : memref<180xf32, #tpu.memory_space<smem>>
    %290 = vector.broadcast %289 : f32 to vector<8x128xf32>
    %291 = arith.mulf %290, %1 : vector<8x128xf32>
    %292 = arith.addf %288, %291 : vector<8x128xf32>
    %c68 = arith.constant 68 : index
    %293 = memref.load %arg0[%c68] : memref<180xf32, #tpu.memory_space<smem>>
    %294 = vector.broadcast %293 : f32 to vector<8x128xf32>
    %295 = arith.addf %292, %294 : vector<8x128xf32>
    %c69 = arith.constant 69 : index
    %296 = memref.load %arg0[%c69] : memref<180xf32, #tpu.memory_space<smem>>
    %297 = vector.broadcast %296 : f32 to vector<8x128xf32>
    %298 = arith.mulf %297, %0 : vector<8x128xf32>
    %c70 = arith.constant 70 : index
    %299 = memref.load %arg0[%c70] : memref<180xf32, #tpu.memory_space<smem>>
    %300 = vector.broadcast %299 : f32 to vector<8x128xf32>
    %301 = arith.mulf %300, %1 : vector<8x128xf32>
    %302 = arith.addf %298, %301 : vector<8x128xf32>
    %c71 = arith.constant 71 : index
    %303 = memref.load %arg0[%c71] : memref<180xf32, #tpu.memory_space<smem>>
    %304 = vector.broadcast %303 : f32 to vector<8x128xf32>
    %305 = arith.addf %302, %304 : vector<8x128xf32>
    %cst_24 = arith.constant 0.000000e+00 : f32
    %306 = vector.broadcast %cst_24 : f32 to vector<8x128xf32>
    %307 = arith.cmpf oge, %285, %306 : vector<8x128xf32>
    %cst_25 = arith.constant 0.000000e+00 : f32
    %308 = vector.broadcast %cst_25 : f32 to vector<8x128xf32>
    %309 = arith.cmpf oge, %295, %308 : vector<8x128xf32>
    %310 = arith.andi %307, %309 : vector<8x128xi1>
    %cst_26 = arith.constant 0.000000e+00 : f32
    %311 = vector.broadcast %cst_26 : f32 to vector<8x128xf32>
    %312 = arith.cmpf oge, %305, %311 : vector<8x128xf32>
    %313 = arith.andi %310, %312 : vector<8x128xi1>
    %314 = arith.ori %275, %313 : vector<8x128xi1>
    %c72 = arith.constant 72 : index
    %315 = memref.load %arg0[%c72] : memref<180xf32, #tpu.memory_space<smem>>
    %316 = vector.broadcast %315 : f32 to vector<8x128xf32>
    %317 = arith.mulf %316, %0 : vector<8x128xf32>
    %c73 = arith.constant 73 : index
    %318 = memref.load %arg0[%c73] : memref<180xf32, #tpu.memory_space<smem>>
    %319 = vector.broadcast %318 : f32 to vector<8x128xf32>
    %320 = arith.mulf %319, %1 : vector<8x128xf32>
    %321 = arith.addf %317, %320 : vector<8x128xf32>
    %c74 = arith.constant 74 : index
    %322 = memref.load %arg0[%c74] : memref<180xf32, #tpu.memory_space<smem>>
    %323 = vector.broadcast %322 : f32 to vector<8x128xf32>
    %324 = arith.addf %321, %323 : vector<8x128xf32>
    %c75 = arith.constant 75 : index
    %325 = memref.load %arg0[%c75] : memref<180xf32, #tpu.memory_space<smem>>
    %326 = vector.broadcast %325 : f32 to vector<8x128xf32>
    %327 = arith.mulf %326, %0 : vector<8x128xf32>
    %c76 = arith.constant 76 : index
    %328 = memref.load %arg0[%c76] : memref<180xf32, #tpu.memory_space<smem>>
    %329 = vector.broadcast %328 : f32 to vector<8x128xf32>
    %330 = arith.mulf %329, %1 : vector<8x128xf32>
    %331 = arith.addf %327, %330 : vector<8x128xf32>
    %c77 = arith.constant 77 : index
    %332 = memref.load %arg0[%c77] : memref<180xf32, #tpu.memory_space<smem>>
    %333 = vector.broadcast %332 : f32 to vector<8x128xf32>
    %334 = arith.addf %331, %333 : vector<8x128xf32>
    %c78 = arith.constant 78 : index
    %335 = memref.load %arg0[%c78] : memref<180xf32, #tpu.memory_space<smem>>
    %336 = vector.broadcast %335 : f32 to vector<8x128xf32>
    %337 = arith.mulf %336, %0 : vector<8x128xf32>
    %c79 = arith.constant 79 : index
    %338 = memref.load %arg0[%c79] : memref<180xf32, #tpu.memory_space<smem>>
    %339 = vector.broadcast %338 : f32 to vector<8x128xf32>
    %340 = arith.mulf %339, %1 : vector<8x128xf32>
    %341 = arith.addf %337, %340 : vector<8x128xf32>
    %c80 = arith.constant 80 : index
    %342 = memref.load %arg0[%c80] : memref<180xf32, #tpu.memory_space<smem>>
    %343 = vector.broadcast %342 : f32 to vector<8x128xf32>
    %344 = arith.addf %341, %343 : vector<8x128xf32>
    %cst_27 = arith.constant 0.000000e+00 : f32
    %345 = vector.broadcast %cst_27 : f32 to vector<8x128xf32>
    %346 = arith.cmpf oge, %324, %345 : vector<8x128xf32>
    %cst_28 = arith.constant 0.000000e+00 : f32
    %347 = vector.broadcast %cst_28 : f32 to vector<8x128xf32>
    %348 = arith.cmpf oge, %334, %347 : vector<8x128xf32>
    %349 = arith.andi %346, %348 : vector<8x128xi1>
    %cst_29 = arith.constant 0.000000e+00 : f32
    %350 = vector.broadcast %cst_29 : f32 to vector<8x128xf32>
    %351 = arith.cmpf oge, %344, %350 : vector<8x128xf32>
    %352 = arith.andi %349, %351 : vector<8x128xi1>
    %353 = arith.ori %314, %352 : vector<8x128xi1>
    %c81 = arith.constant 81 : index
    %354 = memref.load %arg0[%c81] : memref<180xf32, #tpu.memory_space<smem>>
    %355 = vector.broadcast %354 : f32 to vector<8x128xf32>
    %356 = arith.mulf %355, %0 : vector<8x128xf32>
    %c82 = arith.constant 82 : index
    %357 = memref.load %arg0[%c82] : memref<180xf32, #tpu.memory_space<smem>>
    %358 = vector.broadcast %357 : f32 to vector<8x128xf32>
    %359 = arith.mulf %358, %1 : vector<8x128xf32>
    %360 = arith.addf %356, %359 : vector<8x128xf32>
    %c83 = arith.constant 83 : index
    %361 = memref.load %arg0[%c83] : memref<180xf32, #tpu.memory_space<smem>>
    %362 = vector.broadcast %361 : f32 to vector<8x128xf32>
    %363 = arith.addf %360, %362 : vector<8x128xf32>
    %c84 = arith.constant 84 : index
    %364 = memref.load %arg0[%c84] : memref<180xf32, #tpu.memory_space<smem>>
    %365 = vector.broadcast %364 : f32 to vector<8x128xf32>
    %366 = arith.mulf %365, %0 : vector<8x128xf32>
    %c85 = arith.constant 85 : index
    %367 = memref.load %arg0[%c85] : memref<180xf32, #tpu.memory_space<smem>>
    %368 = vector.broadcast %367 : f32 to vector<8x128xf32>
    %369 = arith.mulf %368, %1 : vector<8x128xf32>
    %370 = arith.addf %366, %369 : vector<8x128xf32>
    %c86 = arith.constant 86 : index
    %371 = memref.load %arg0[%c86] : memref<180xf32, #tpu.memory_space<smem>>
    %372 = vector.broadcast %371 : f32 to vector<8x128xf32>
    %373 = arith.addf %370, %372 : vector<8x128xf32>
    %c87 = arith.constant 87 : index
    %374 = memref.load %arg0[%c87] : memref<180xf32, #tpu.memory_space<smem>>
    %375 = vector.broadcast %374 : f32 to vector<8x128xf32>
    %376 = arith.mulf %375, %0 : vector<8x128xf32>
    %c88 = arith.constant 88 : index
    %377 = memref.load %arg0[%c88] : memref<180xf32, #tpu.memory_space<smem>>
    %378 = vector.broadcast %377 : f32 to vector<8x128xf32>
    %379 = arith.mulf %378, %1 : vector<8x128xf32>
    %380 = arith.addf %376, %379 : vector<8x128xf32>
    %c89 = arith.constant 89 : index
    %381 = memref.load %arg0[%c89] : memref<180xf32, #tpu.memory_space<smem>>
    %382 = vector.broadcast %381 : f32 to vector<8x128xf32>
    %383 = arith.addf %380, %382 : vector<8x128xf32>
    %cst_30 = arith.constant 0.000000e+00 : f32
    %384 = vector.broadcast %cst_30 : f32 to vector<8x128xf32>
    %385 = arith.cmpf oge, %363, %384 : vector<8x128xf32>
    %cst_31 = arith.constant 0.000000e+00 : f32
    %386 = vector.broadcast %cst_31 : f32 to vector<8x128xf32>
    %387 = arith.cmpf oge, %373, %386 : vector<8x128xf32>
    %388 = arith.andi %385, %387 : vector<8x128xi1>
    %cst_32 = arith.constant 0.000000e+00 : f32
    %389 = vector.broadcast %cst_32 : f32 to vector<8x128xf32>
    %390 = arith.cmpf oge, %383, %389 : vector<8x128xf32>
    %391 = arith.andi %388, %390 : vector<8x128xi1>
    %392 = arith.ori %353, %391 : vector<8x128xi1>
    %c90 = arith.constant 90 : index
    %393 = memref.load %arg0[%c90] : memref<180xf32, #tpu.memory_space<smem>>
    %394 = vector.broadcast %393 : f32 to vector<8x128xf32>
    %395 = arith.mulf %394, %0 : vector<8x128xf32>
    %c91 = arith.constant 91 : index
    %396 = memref.load %arg0[%c91] : memref<180xf32, #tpu.memory_space<smem>>
    %397 = vector.broadcast %396 : f32 to vector<8x128xf32>
    %398 = arith.mulf %397, %1 : vector<8x128xf32>
    %399 = arith.addf %395, %398 : vector<8x128xf32>
    %c92 = arith.constant 92 : index
    %400 = memref.load %arg0[%c92] : memref<180xf32, #tpu.memory_space<smem>>
    %401 = vector.broadcast %400 : f32 to vector<8x128xf32>
    %402 = arith.addf %399, %401 : vector<8x128xf32>
    %c93 = arith.constant 93 : index
    %403 = memref.load %arg0[%c93] : memref<180xf32, #tpu.memory_space<smem>>
    %404 = vector.broadcast %403 : f32 to vector<8x128xf32>
    %405 = arith.mulf %404, %0 : vector<8x128xf32>
    %c94 = arith.constant 94 : index
    %406 = memref.load %arg0[%c94] : memref<180xf32, #tpu.memory_space<smem>>
    %407 = vector.broadcast %406 : f32 to vector<8x128xf32>
    %408 = arith.mulf %407, %1 : vector<8x128xf32>
    %409 = arith.addf %405, %408 : vector<8x128xf32>
    %c95 = arith.constant 95 : index
    %410 = memref.load %arg0[%c95] : memref<180xf32, #tpu.memory_space<smem>>
    %411 = vector.broadcast %410 : f32 to vector<8x128xf32>
    %412 = arith.addf %409, %411 : vector<8x128xf32>
    %c96 = arith.constant 96 : index
    %413 = memref.load %arg0[%c96] : memref<180xf32, #tpu.memory_space<smem>>
    %414 = vector.broadcast %413 : f32 to vector<8x128xf32>
    %415 = arith.mulf %414, %0 : vector<8x128xf32>
    %c97 = arith.constant 97 : index
    %416 = memref.load %arg0[%c97] : memref<180xf32, #tpu.memory_space<smem>>
    %417 = vector.broadcast %416 : f32 to vector<8x128xf32>
    %418 = arith.mulf %417, %1 : vector<8x128xf32>
    %419 = arith.addf %415, %418 : vector<8x128xf32>
    %c98 = arith.constant 98 : index
    %420 = memref.load %arg0[%c98] : memref<180xf32, #tpu.memory_space<smem>>
    %421 = vector.broadcast %420 : f32 to vector<8x128xf32>
    %422 = arith.addf %419, %421 : vector<8x128xf32>
    %cst_33 = arith.constant 0.000000e+00 : f32
    %423 = vector.broadcast %cst_33 : f32 to vector<8x128xf32>
    %424 = arith.cmpf oge, %402, %423 : vector<8x128xf32>
    %cst_34 = arith.constant 0.000000e+00 : f32
    %425 = vector.broadcast %cst_34 : f32 to vector<8x128xf32>
    %426 = arith.cmpf oge, %412, %425 : vector<8x128xf32>
    %427 = arith.andi %424, %426 : vector<8x128xi1>
    %cst_35 = arith.constant 0.000000e+00 : f32
    %428 = vector.broadcast %cst_35 : f32 to vector<8x128xf32>
    %429 = arith.cmpf oge, %422, %428 : vector<8x128xf32>
    %430 = arith.andi %427, %429 : vector<8x128xi1>
    %431 = arith.ori %392, %430 : vector<8x128xi1>
    %c99 = arith.constant 99 : index
    %432 = memref.load %arg0[%c99] : memref<180xf32, #tpu.memory_space<smem>>
    %433 = vector.broadcast %432 : f32 to vector<8x128xf32>
    %434 = arith.mulf %433, %0 : vector<8x128xf32>
    %c100 = arith.constant 100 : index
    %435 = memref.load %arg0[%c100] : memref<180xf32, #tpu.memory_space<smem>>
    %436 = vector.broadcast %435 : f32 to vector<8x128xf32>
    %437 = arith.mulf %436, %1 : vector<8x128xf32>
    %438 = arith.addf %434, %437 : vector<8x128xf32>
    %c101 = arith.constant 101 : index
    %439 = memref.load %arg0[%c101] : memref<180xf32, #tpu.memory_space<smem>>
    %440 = vector.broadcast %439 : f32 to vector<8x128xf32>
    %441 = arith.addf %438, %440 : vector<8x128xf32>
    %c102 = arith.constant 102 : index
    %442 = memref.load %arg0[%c102] : memref<180xf32, #tpu.memory_space<smem>>
    %443 = vector.broadcast %442 : f32 to vector<8x128xf32>
    %444 = arith.mulf %443, %0 : vector<8x128xf32>
    %c103 = arith.constant 103 : index
    %445 = memref.load %arg0[%c103] : memref<180xf32, #tpu.memory_space<smem>>
    %446 = vector.broadcast %445 : f32 to vector<8x128xf32>
    %447 = arith.mulf %446, %1 : vector<8x128xf32>
    %448 = arith.addf %444, %447 : vector<8x128xf32>
    %c104 = arith.constant 104 : index
    %449 = memref.load %arg0[%c104] : memref<180xf32, #tpu.memory_space<smem>>
    %450 = vector.broadcast %449 : f32 to vector<8x128xf32>
    %451 = arith.addf %448, %450 : vector<8x128xf32>
    %c105 = arith.constant 105 : index
    %452 = memref.load %arg0[%c105] : memref<180xf32, #tpu.memory_space<smem>>
    %453 = vector.broadcast %452 : f32 to vector<8x128xf32>
    %454 = arith.mulf %453, %0 : vector<8x128xf32>
    %c106 = arith.constant 106 : index
    %455 = memref.load %arg0[%c106] : memref<180xf32, #tpu.memory_space<smem>>
    %456 = vector.broadcast %455 : f32 to vector<8x128xf32>
    %457 = arith.mulf %456, %1 : vector<8x128xf32>
    %458 = arith.addf %454, %457 : vector<8x128xf32>
    %c107 = arith.constant 107 : index
    %459 = memref.load %arg0[%c107] : memref<180xf32, #tpu.memory_space<smem>>
    %460 = vector.broadcast %459 : f32 to vector<8x128xf32>
    %461 = arith.addf %458, %460 : vector<8x128xf32>
    %cst_36 = arith.constant 0.000000e+00 : f32
    %462 = vector.broadcast %cst_36 : f32 to vector<8x128xf32>
    %463 = arith.cmpf oge, %441, %462 : vector<8x128xf32>
    %cst_37 = arith.constant 0.000000e+00 : f32
    %464 = vector.broadcast %cst_37 : f32 to vector<8x128xf32>
    %465 = arith.cmpf oge, %451, %464 : vector<8x128xf32>
    %466 = arith.andi %463, %465 : vector<8x128xi1>
    %cst_38 = arith.constant 0.000000e+00 : f32
    %467 = vector.broadcast %cst_38 : f32 to vector<8x128xf32>
    %468 = arith.cmpf oge, %461, %467 : vector<8x128xf32>
    %469 = arith.andi %466, %468 : vector<8x128xi1>
    %470 = arith.ori %431, %469 : vector<8x128xi1>
    %c108 = arith.constant 108 : index
    %471 = memref.load %arg0[%c108] : memref<180xf32, #tpu.memory_space<smem>>
    %472 = vector.broadcast %471 : f32 to vector<8x128xf32>
    %473 = arith.mulf %472, %0 : vector<8x128xf32>
    %c109 = arith.constant 109 : index
    %474 = memref.load %arg0[%c109] : memref<180xf32, #tpu.memory_space<smem>>
    %475 = vector.broadcast %474 : f32 to vector<8x128xf32>
    %476 = arith.mulf %475, %1 : vector<8x128xf32>
    %477 = arith.addf %473, %476 : vector<8x128xf32>
    %c110 = arith.constant 110 : index
    %478 = memref.load %arg0[%c110] : memref<180xf32, #tpu.memory_space<smem>>
    %479 = vector.broadcast %478 : f32 to vector<8x128xf32>
    %480 = arith.addf %477, %479 : vector<8x128xf32>
    %c111 = arith.constant 111 : index
    %481 = memref.load %arg0[%c111] : memref<180xf32, #tpu.memory_space<smem>>
    %482 = vector.broadcast %481 : f32 to vector<8x128xf32>
    %483 = arith.mulf %482, %0 : vector<8x128xf32>
    %c112 = arith.constant 112 : index
    %484 = memref.load %arg0[%c112] : memref<180xf32, #tpu.memory_space<smem>>
    %485 = vector.broadcast %484 : f32 to vector<8x128xf32>
    %486 = arith.mulf %485, %1 : vector<8x128xf32>
    %487 = arith.addf %483, %486 : vector<8x128xf32>
    %c113 = arith.constant 113 : index
    %488 = memref.load %arg0[%c113] : memref<180xf32, #tpu.memory_space<smem>>
    %489 = vector.broadcast %488 : f32 to vector<8x128xf32>
    %490 = arith.addf %487, %489 : vector<8x128xf32>
    %c114 = arith.constant 114 : index
    %491 = memref.load %arg0[%c114] : memref<180xf32, #tpu.memory_space<smem>>
    %492 = vector.broadcast %491 : f32 to vector<8x128xf32>
    %493 = arith.mulf %492, %0 : vector<8x128xf32>
    %c115 = arith.constant 115 : index
    %494 = memref.load %arg0[%c115] : memref<180xf32, #tpu.memory_space<smem>>
    %495 = vector.broadcast %494 : f32 to vector<8x128xf32>
    %496 = arith.mulf %495, %1 : vector<8x128xf32>
    %497 = arith.addf %493, %496 : vector<8x128xf32>
    %c116 = arith.constant 116 : index
    %498 = memref.load %arg0[%c116] : memref<180xf32, #tpu.memory_space<smem>>
    %499 = vector.broadcast %498 : f32 to vector<8x128xf32>
    %500 = arith.addf %497, %499 : vector<8x128xf32>
    %cst_39 = arith.constant 0.000000e+00 : f32
    %501 = vector.broadcast %cst_39 : f32 to vector<8x128xf32>
    %502 = arith.cmpf oge, %480, %501 : vector<8x128xf32>
    %cst_40 = arith.constant 0.000000e+00 : f32
    %503 = vector.broadcast %cst_40 : f32 to vector<8x128xf32>
    %504 = arith.cmpf oge, %490, %503 : vector<8x128xf32>
    %505 = arith.andi %502, %504 : vector<8x128xi1>
    %cst_41 = arith.constant 0.000000e+00 : f32
    %506 = vector.broadcast %cst_41 : f32 to vector<8x128xf32>
    %507 = arith.cmpf oge, %500, %506 : vector<8x128xf32>
    %508 = arith.andi %505, %507 : vector<8x128xi1>
    %509 = arith.ori %470, %508 : vector<8x128xi1>
    %c117 = arith.constant 117 : index
    %510 = memref.load %arg0[%c117] : memref<180xf32, #tpu.memory_space<smem>>
    %511 = vector.broadcast %510 : f32 to vector<8x128xf32>
    %512 = arith.mulf %511, %0 : vector<8x128xf32>
    %c118 = arith.constant 118 : index
    %513 = memref.load %arg0[%c118] : memref<180xf32, #tpu.memory_space<smem>>
    %514 = vector.broadcast %513 : f32 to vector<8x128xf32>
    %515 = arith.mulf %514, %1 : vector<8x128xf32>
    %516 = arith.addf %512, %515 : vector<8x128xf32>
    %c119 = arith.constant 119 : index
    %517 = memref.load %arg0[%c119] : memref<180xf32, #tpu.memory_space<smem>>
    %518 = vector.broadcast %517 : f32 to vector<8x128xf32>
    %519 = arith.addf %516, %518 : vector<8x128xf32>
    %c120 = arith.constant 120 : index
    %520 = memref.load %arg0[%c120] : memref<180xf32, #tpu.memory_space<smem>>
    %521 = vector.broadcast %520 : f32 to vector<8x128xf32>
    %522 = arith.mulf %521, %0 : vector<8x128xf32>
    %c121 = arith.constant 121 : index
    %523 = memref.load %arg0[%c121] : memref<180xf32, #tpu.memory_space<smem>>
    %524 = vector.broadcast %523 : f32 to vector<8x128xf32>
    %525 = arith.mulf %524, %1 : vector<8x128xf32>
    %526 = arith.addf %522, %525 : vector<8x128xf32>
    %c122 = arith.constant 122 : index
    %527 = memref.load %arg0[%c122] : memref<180xf32, #tpu.memory_space<smem>>
    %528 = vector.broadcast %527 : f32 to vector<8x128xf32>
    %529 = arith.addf %526, %528 : vector<8x128xf32>
    %c123 = arith.constant 123 : index
    %530 = memref.load %arg0[%c123] : memref<180xf32, #tpu.memory_space<smem>>
    %531 = vector.broadcast %530 : f32 to vector<8x128xf32>
    %532 = arith.mulf %531, %0 : vector<8x128xf32>
    %c124 = arith.constant 124 : index
    %533 = memref.load %arg0[%c124] : memref<180xf32, #tpu.memory_space<smem>>
    %534 = vector.broadcast %533 : f32 to vector<8x128xf32>
    %535 = arith.mulf %534, %1 : vector<8x128xf32>
    %536 = arith.addf %532, %535 : vector<8x128xf32>
    %c125 = arith.constant 125 : index
    %537 = memref.load %arg0[%c125] : memref<180xf32, #tpu.memory_space<smem>>
    %538 = vector.broadcast %537 : f32 to vector<8x128xf32>
    %539 = arith.addf %536, %538 : vector<8x128xf32>
    %cst_42 = arith.constant 0.000000e+00 : f32
    %540 = vector.broadcast %cst_42 : f32 to vector<8x128xf32>
    %541 = arith.cmpf oge, %519, %540 : vector<8x128xf32>
    %cst_43 = arith.constant 0.000000e+00 : f32
    %542 = vector.broadcast %cst_43 : f32 to vector<8x128xf32>
    %543 = arith.cmpf oge, %529, %542 : vector<8x128xf32>
    %544 = arith.andi %541, %543 : vector<8x128xi1>
    %cst_44 = arith.constant 0.000000e+00 : f32
    %545 = vector.broadcast %cst_44 : f32 to vector<8x128xf32>
    %546 = arith.cmpf oge, %539, %545 : vector<8x128xf32>
    %547 = arith.andi %544, %546 : vector<8x128xi1>
    %548 = arith.ori %509, %547 : vector<8x128xi1>
    %c126 = arith.constant 126 : index
    %549 = memref.load %arg0[%c126] : memref<180xf32, #tpu.memory_space<smem>>
    %550 = vector.broadcast %549 : f32 to vector<8x128xf32>
    %551 = arith.mulf %550, %0 : vector<8x128xf32>
    %c127 = arith.constant 127 : index
    %552 = memref.load %arg0[%c127] : memref<180xf32, #tpu.memory_space<smem>>
    %553 = vector.broadcast %552 : f32 to vector<8x128xf32>
    %554 = arith.mulf %553, %1 : vector<8x128xf32>
    %555 = arith.addf %551, %554 : vector<8x128xf32>
    %c128 = arith.constant 128 : index
    %556 = memref.load %arg0[%c128] : memref<180xf32, #tpu.memory_space<smem>>
    %557 = vector.broadcast %556 : f32 to vector<8x128xf32>
    %558 = arith.addf %555, %557 : vector<8x128xf32>
    %c129 = arith.constant 129 : index
    %559 = memref.load %arg0[%c129] : memref<180xf32, #tpu.memory_space<smem>>
    %560 = vector.broadcast %559 : f32 to vector<8x128xf32>
    %561 = arith.mulf %560, %0 : vector<8x128xf32>
    %c130 = arith.constant 130 : index
    %562 = memref.load %arg0[%c130] : memref<180xf32, #tpu.memory_space<smem>>
    %563 = vector.broadcast %562 : f32 to vector<8x128xf32>
    %564 = arith.mulf %563, %1 : vector<8x128xf32>
    %565 = arith.addf %561, %564 : vector<8x128xf32>
    %c131 = arith.constant 131 : index
    %566 = memref.load %arg0[%c131] : memref<180xf32, #tpu.memory_space<smem>>
    %567 = vector.broadcast %566 : f32 to vector<8x128xf32>
    %568 = arith.addf %565, %567 : vector<8x128xf32>
    %c132 = arith.constant 132 : index
    %569 = memref.load %arg0[%c132] : memref<180xf32, #tpu.memory_space<smem>>
    %570 = vector.broadcast %569 : f32 to vector<8x128xf32>
    %571 = arith.mulf %570, %0 : vector<8x128xf32>
    %c133 = arith.constant 133 : index
    %572 = memref.load %arg0[%c133] : memref<180xf32, #tpu.memory_space<smem>>
    %573 = vector.broadcast %572 : f32 to vector<8x128xf32>
    %574 = arith.mulf %573, %1 : vector<8x128xf32>
    %575 = arith.addf %571, %574 : vector<8x128xf32>
    %c134 = arith.constant 134 : index
    %576 = memref.load %arg0[%c134] : memref<180xf32, #tpu.memory_space<smem>>
    %577 = vector.broadcast %576 : f32 to vector<8x128xf32>
    %578 = arith.addf %575, %577 : vector<8x128xf32>
    %cst_45 = arith.constant 0.000000e+00 : f32
    %579 = vector.broadcast %cst_45 : f32 to vector<8x128xf32>
    %580 = arith.cmpf oge, %558, %579 : vector<8x128xf32>
    %cst_46 = arith.constant 0.000000e+00 : f32
    %581 = vector.broadcast %cst_46 : f32 to vector<8x128xf32>
    %582 = arith.cmpf oge, %568, %581 : vector<8x128xf32>
    %583 = arith.andi %580, %582 : vector<8x128xi1>
    %cst_47 = arith.constant 0.000000e+00 : f32
    %584 = vector.broadcast %cst_47 : f32 to vector<8x128xf32>
    %585 = arith.cmpf oge, %578, %584 : vector<8x128xf32>
    %586 = arith.andi %583, %585 : vector<8x128xi1>
    %587 = arith.ori %548, %586 : vector<8x128xi1>
    %c135 = arith.constant 135 : index
    %588 = memref.load %arg0[%c135] : memref<180xf32, #tpu.memory_space<smem>>
    %589 = vector.broadcast %588 : f32 to vector<8x128xf32>
    %590 = arith.mulf %589, %0 : vector<8x128xf32>
    %c136 = arith.constant 136 : index
    %591 = memref.load %arg0[%c136] : memref<180xf32, #tpu.memory_space<smem>>
    %592 = vector.broadcast %591 : f32 to vector<8x128xf32>
    %593 = arith.mulf %592, %1 : vector<8x128xf32>
    %594 = arith.addf %590, %593 : vector<8x128xf32>
    %c137 = arith.constant 137 : index
    %595 = memref.load %arg0[%c137] : memref<180xf32, #tpu.memory_space<smem>>
    %596 = vector.broadcast %595 : f32 to vector<8x128xf32>
    %597 = arith.addf %594, %596 : vector<8x128xf32>
    %c138 = arith.constant 138 : index
    %598 = memref.load %arg0[%c138] : memref<180xf32, #tpu.memory_space<smem>>
    %599 = vector.broadcast %598 : f32 to vector<8x128xf32>
    %600 = arith.mulf %599, %0 : vector<8x128xf32>
    %c139 = arith.constant 139 : index
    %601 = memref.load %arg0[%c139] : memref<180xf32, #tpu.memory_space<smem>>
    %602 = vector.broadcast %601 : f32 to vector<8x128xf32>
    %603 = arith.mulf %602, %1 : vector<8x128xf32>
    %604 = arith.addf %600, %603 : vector<8x128xf32>
    %c140 = arith.constant 140 : index
    %605 = memref.load %arg0[%c140] : memref<180xf32, #tpu.memory_space<smem>>
    %606 = vector.broadcast %605 : f32 to vector<8x128xf32>
    %607 = arith.addf %604, %606 : vector<8x128xf32>
    %c141 = arith.constant 141 : index
    %608 = memref.load %arg0[%c141] : memref<180xf32, #tpu.memory_space<smem>>
    %609 = vector.broadcast %608 : f32 to vector<8x128xf32>
    %610 = arith.mulf %609, %0 : vector<8x128xf32>
    %c142 = arith.constant 142 : index
    %611 = memref.load %arg0[%c142] : memref<180xf32, #tpu.memory_space<smem>>
    %612 = vector.broadcast %611 : f32 to vector<8x128xf32>
    %613 = arith.mulf %612, %1 : vector<8x128xf32>
    %614 = arith.addf %610, %613 : vector<8x128xf32>
    %c143 = arith.constant 143 : index
    %615 = memref.load %arg0[%c143] : memref<180xf32, #tpu.memory_space<smem>>
    %616 = vector.broadcast %615 : f32 to vector<8x128xf32>
    %617 = arith.addf %614, %616 : vector<8x128xf32>
    %cst_48 = arith.constant 0.000000e+00 : f32
    %618 = vector.broadcast %cst_48 : f32 to vector<8x128xf32>
    %619 = arith.cmpf oge, %597, %618 : vector<8x128xf32>
    %cst_49 = arith.constant 0.000000e+00 : f32
    %620 = vector.broadcast %cst_49 : f32 to vector<8x128xf32>
    %621 = arith.cmpf oge, %607, %620 : vector<8x128xf32>
    %622 = arith.andi %619, %621 : vector<8x128xi1>
    %cst_50 = arith.constant 0.000000e+00 : f32
    %623 = vector.broadcast %cst_50 : f32 to vector<8x128xf32>
    %624 = arith.cmpf oge, %617, %623 : vector<8x128xf32>
    %625 = arith.andi %622, %624 : vector<8x128xi1>
    %626 = arith.ori %587, %625 : vector<8x128xi1>
    %c144 = arith.constant 144 : index
    %627 = memref.load %arg0[%c144] : memref<180xf32, #tpu.memory_space<smem>>
    %628 = vector.broadcast %627 : f32 to vector<8x128xf32>
    %629 = arith.mulf %628, %0 : vector<8x128xf32>
    %c145 = arith.constant 145 : index
    %630 = memref.load %arg0[%c145] : memref<180xf32, #tpu.memory_space<smem>>
    %631 = vector.broadcast %630 : f32 to vector<8x128xf32>
    %632 = arith.mulf %631, %1 : vector<8x128xf32>
    %633 = arith.addf %629, %632 : vector<8x128xf32>
    %c146 = arith.constant 146 : index
    %634 = memref.load %arg0[%c146] : memref<180xf32, #tpu.memory_space<smem>>
    %635 = vector.broadcast %634 : f32 to vector<8x128xf32>
    %636 = arith.addf %633, %635 : vector<8x128xf32>
    %c147 = arith.constant 147 : index
    %637 = memref.load %arg0[%c147] : memref<180xf32, #tpu.memory_space<smem>>
    %638 = vector.broadcast %637 : f32 to vector<8x128xf32>
    %639 = arith.mulf %638, %0 : vector<8x128xf32>
    %c148 = arith.constant 148 : index
    %640 = memref.load %arg0[%c148] : memref<180xf32, #tpu.memory_space<smem>>
    %641 = vector.broadcast %640 : f32 to vector<8x128xf32>
    %642 = arith.mulf %641, %1 : vector<8x128xf32>
    %643 = arith.addf %639, %642 : vector<8x128xf32>
    %c149 = arith.constant 149 : index
    %644 = memref.load %arg0[%c149] : memref<180xf32, #tpu.memory_space<smem>>
    %645 = vector.broadcast %644 : f32 to vector<8x128xf32>
    %646 = arith.addf %643, %645 : vector<8x128xf32>
    %c150 = arith.constant 150 : index
    %647 = memref.load %arg0[%c150] : memref<180xf32, #tpu.memory_space<smem>>
    %648 = vector.broadcast %647 : f32 to vector<8x128xf32>
    %649 = arith.mulf %648, %0 : vector<8x128xf32>
    %c151 = arith.constant 151 : index
    %650 = memref.load %arg0[%c151] : memref<180xf32, #tpu.memory_space<smem>>
    %651 = vector.broadcast %650 : f32 to vector<8x128xf32>
    %652 = arith.mulf %651, %1 : vector<8x128xf32>
    %653 = arith.addf %649, %652 : vector<8x128xf32>
    %c152 = arith.constant 152 : index
    %654 = memref.load %arg0[%c152] : memref<180xf32, #tpu.memory_space<smem>>
    %655 = vector.broadcast %654 : f32 to vector<8x128xf32>
    %656 = arith.addf %653, %655 : vector<8x128xf32>
    %cst_51 = arith.constant 0.000000e+00 : f32
    %657 = vector.broadcast %cst_51 : f32 to vector<8x128xf32>
    %658 = arith.cmpf oge, %636, %657 : vector<8x128xf32>
    %cst_52 = arith.constant 0.000000e+00 : f32
    %659 = vector.broadcast %cst_52 : f32 to vector<8x128xf32>
    %660 = arith.cmpf oge, %646, %659 : vector<8x128xf32>
    %661 = arith.andi %658, %660 : vector<8x128xi1>
    %cst_53 = arith.constant 0.000000e+00 : f32
    %662 = vector.broadcast %cst_53 : f32 to vector<8x128xf32>
    %663 = arith.cmpf oge, %656, %662 : vector<8x128xf32>
    %664 = arith.andi %661, %663 : vector<8x128xi1>
    %665 = arith.ori %626, %664 : vector<8x128xi1>
    %c153 = arith.constant 153 : index
    %666 = memref.load %arg0[%c153] : memref<180xf32, #tpu.memory_space<smem>>
    %667 = vector.broadcast %666 : f32 to vector<8x128xf32>
    %668 = arith.mulf %667, %0 : vector<8x128xf32>
    %c154 = arith.constant 154 : index
    %669 = memref.load %arg0[%c154] : memref<180xf32, #tpu.memory_space<smem>>
    %670 = vector.broadcast %669 : f32 to vector<8x128xf32>
    %671 = arith.mulf %670, %1 : vector<8x128xf32>
    %672 = arith.addf %668, %671 : vector<8x128xf32>
    %c155 = arith.constant 155 : index
    %673 = memref.load %arg0[%c155] : memref<180xf32, #tpu.memory_space<smem>>
    %674 = vector.broadcast %673 : f32 to vector<8x128xf32>
    %675 = arith.addf %672, %674 : vector<8x128xf32>
    %c156 = arith.constant 156 : index
    %676 = memref.load %arg0[%c156] : memref<180xf32, #tpu.memory_space<smem>>
    %677 = vector.broadcast %676 : f32 to vector<8x128xf32>
    %678 = arith.mulf %677, %0 : vector<8x128xf32>
    %c157 = arith.constant 157 : index
    %679 = memref.load %arg0[%c157] : memref<180xf32, #tpu.memory_space<smem>>
    %680 = vector.broadcast %679 : f32 to vector<8x128xf32>
    %681 = arith.mulf %680, %1 : vector<8x128xf32>
    %682 = arith.addf %678, %681 : vector<8x128xf32>
    %c158 = arith.constant 158 : index
    %683 = memref.load %arg0[%c158] : memref<180xf32, #tpu.memory_space<smem>>
    %684 = vector.broadcast %683 : f32 to vector<8x128xf32>
    %685 = arith.addf %682, %684 : vector<8x128xf32>
    %c159 = arith.constant 159 : index
    %686 = memref.load %arg0[%c159] : memref<180xf32, #tpu.memory_space<smem>>
    %687 = vector.broadcast %686 : f32 to vector<8x128xf32>
    %688 = arith.mulf %687, %0 : vector<8x128xf32>
    %c160 = arith.constant 160 : index
    %689 = memref.load %arg0[%c160] : memref<180xf32, #tpu.memory_space<smem>>
    %690 = vector.broadcast %689 : f32 to vector<8x128xf32>
    %691 = arith.mulf %690, %1 : vector<8x128xf32>
    %692 = arith.addf %688, %691 : vector<8x128xf32>
    %c161 = arith.constant 161 : index
    %693 = memref.load %arg0[%c161] : memref<180xf32, #tpu.memory_space<smem>>
    %694 = vector.broadcast %693 : f32 to vector<8x128xf32>
    %695 = arith.addf %692, %694 : vector<8x128xf32>
    %cst_54 = arith.constant 0.000000e+00 : f32
    %696 = vector.broadcast %cst_54 : f32 to vector<8x128xf32>
    %697 = arith.cmpf oge, %675, %696 : vector<8x128xf32>
    %cst_55 = arith.constant 0.000000e+00 : f32
    %698 = vector.broadcast %cst_55 : f32 to vector<8x128xf32>
    %699 = arith.cmpf oge, %685, %698 : vector<8x128xf32>
    %700 = arith.andi %697, %699 : vector<8x128xi1>
    %cst_56 = arith.constant 0.000000e+00 : f32
    %701 = vector.broadcast %cst_56 : f32 to vector<8x128xf32>
    %702 = arith.cmpf oge, %695, %701 : vector<8x128xf32>
    %703 = arith.andi %700, %702 : vector<8x128xi1>
    %704 = arith.ori %665, %703 : vector<8x128xi1>
    %c162 = arith.constant 162 : index
    %705 = memref.load %arg0[%c162] : memref<180xf32, #tpu.memory_space<smem>>
    %706 = vector.broadcast %705 : f32 to vector<8x128xf32>
    %707 = arith.mulf %706, %0 : vector<8x128xf32>
    %c163 = arith.constant 163 : index
    %708 = memref.load %arg0[%c163] : memref<180xf32, #tpu.memory_space<smem>>
    %709 = vector.broadcast %708 : f32 to vector<8x128xf32>
    %710 = arith.mulf %709, %1 : vector<8x128xf32>
    %711 = arith.addf %707, %710 : vector<8x128xf32>
    %c164 = arith.constant 164 : index
    %712 = memref.load %arg0[%c164] : memref<180xf32, #tpu.memory_space<smem>>
    %713 = vector.broadcast %712 : f32 to vector<8x128xf32>
    %714 = arith.addf %711, %713 : vector<8x128xf32>
    %c165 = arith.constant 165 : index
    %715 = memref.load %arg0[%c165] : memref<180xf32, #tpu.memory_space<smem>>
    %716 = vector.broadcast %715 : f32 to vector<8x128xf32>
    %717 = arith.mulf %716, %0 : vector<8x128xf32>
    %c166 = arith.constant 166 : index
    %718 = memref.load %arg0[%c166] : memref<180xf32, #tpu.memory_space<smem>>
    %719 = vector.broadcast %718 : f32 to vector<8x128xf32>
    %720 = arith.mulf %719, %1 : vector<8x128xf32>
    %721 = arith.addf %717, %720 : vector<8x128xf32>
    %c167 = arith.constant 167 : index
    %722 = memref.load %arg0[%c167] : memref<180xf32, #tpu.memory_space<smem>>
    %723 = vector.broadcast %722 : f32 to vector<8x128xf32>
    %724 = arith.addf %721, %723 : vector<8x128xf32>
    %c168 = arith.constant 168 : index
    %725 = memref.load %arg0[%c168] : memref<180xf32, #tpu.memory_space<smem>>
    %726 = vector.broadcast %725 : f32 to vector<8x128xf32>
    %727 = arith.mulf %726, %0 : vector<8x128xf32>
    %c169 = arith.constant 169 : index
    %728 = memref.load %arg0[%c169] : memref<180xf32, #tpu.memory_space<smem>>
    %729 = vector.broadcast %728 : f32 to vector<8x128xf32>
    %730 = arith.mulf %729, %1 : vector<8x128xf32>
    %731 = arith.addf %727, %730 : vector<8x128xf32>
    %c170 = arith.constant 170 : index
    %732 = memref.load %arg0[%c170] : memref<180xf32, #tpu.memory_space<smem>>
    %733 = vector.broadcast %732 : f32 to vector<8x128xf32>
    %734 = arith.addf %731, %733 : vector<8x128xf32>
    %cst_57 = arith.constant 0.000000e+00 : f32
    %735 = vector.broadcast %cst_57 : f32 to vector<8x128xf32>
    %736 = arith.cmpf oge, %714, %735 : vector<8x128xf32>
    %cst_58 = arith.constant 0.000000e+00 : f32
    %737 = vector.broadcast %cst_58 : f32 to vector<8x128xf32>
    %738 = arith.cmpf oge, %724, %737 : vector<8x128xf32>
    %739 = arith.andi %736, %738 : vector<8x128xi1>
    %cst_59 = arith.constant 0.000000e+00 : f32
    %740 = vector.broadcast %cst_59 : f32 to vector<8x128xf32>
    %741 = arith.cmpf oge, %734, %740 : vector<8x128xf32>
    %742 = arith.andi %739, %741 : vector<8x128xi1>
    %743 = arith.ori %704, %742 : vector<8x128xi1>
    %c171 = arith.constant 171 : index
    %744 = memref.load %arg0[%c171] : memref<180xf32, #tpu.memory_space<smem>>
    %745 = vector.broadcast %744 : f32 to vector<8x128xf32>
    %746 = arith.mulf %745, %0 : vector<8x128xf32>
    %c172 = arith.constant 172 : index
    %747 = memref.load %arg0[%c172] : memref<180xf32, #tpu.memory_space<smem>>
    %748 = vector.broadcast %747 : f32 to vector<8x128xf32>
    %749 = arith.mulf %748, %1 : vector<8x128xf32>
    %750 = arith.addf %746, %749 : vector<8x128xf32>
    %c173 = arith.constant 173 : index
    %751 = memref.load %arg0[%c173] : memref<180xf32, #tpu.memory_space<smem>>
    %752 = vector.broadcast %751 : f32 to vector<8x128xf32>
    %753 = arith.addf %750, %752 : vector<8x128xf32>
    %c174 = arith.constant 174 : index
    %754 = memref.load %arg0[%c174] : memref<180xf32, #tpu.memory_space<smem>>
    %755 = vector.broadcast %754 : f32 to vector<8x128xf32>
    %756 = arith.mulf %755, %0 : vector<8x128xf32>
    %c175 = arith.constant 175 : index
    %757 = memref.load %arg0[%c175] : memref<180xf32, #tpu.memory_space<smem>>
    %758 = vector.broadcast %757 : f32 to vector<8x128xf32>
    %759 = arith.mulf %758, %1 : vector<8x128xf32>
    %760 = arith.addf %756, %759 : vector<8x128xf32>
    %c176 = arith.constant 176 : index
    %761 = memref.load %arg0[%c176] : memref<180xf32, #tpu.memory_space<smem>>
    %762 = vector.broadcast %761 : f32 to vector<8x128xf32>
    %763 = arith.addf %760, %762 : vector<8x128xf32>
    %c177 = arith.constant 177 : index
    %764 = memref.load %arg0[%c177] : memref<180xf32, #tpu.memory_space<smem>>
    %765 = vector.broadcast %764 : f32 to vector<8x128xf32>
    %766 = arith.mulf %765, %0 : vector<8x128xf32>
    %c178 = arith.constant 178 : index
    %767 = memref.load %arg0[%c178] : memref<180xf32, #tpu.memory_space<smem>>
    %768 = vector.broadcast %767 : f32 to vector<8x128xf32>
    %769 = arith.mulf %768, %1 : vector<8x128xf32>
    %770 = arith.addf %766, %769 : vector<8x128xf32>
    %c179 = arith.constant 179 : index
    %771 = memref.load %arg0[%c179] : memref<180xf32, #tpu.memory_space<smem>>
    %772 = vector.broadcast %771 : f32 to vector<8x128xf32>
    %773 = arith.addf %770, %772 : vector<8x128xf32>
    %cst_60 = arith.constant 0.000000e+00 : f32
    %774 = vector.broadcast %cst_60 : f32 to vector<8x128xf32>
    %775 = arith.cmpf oge, %753, %774 : vector<8x128xf32>
    %cst_61 = arith.constant 0.000000e+00 : f32
    %776 = vector.broadcast %cst_61 : f32 to vector<8x128xf32>
    %777 = arith.cmpf oge, %763, %776 : vector<8x128xf32>
    %778 = arith.andi %775, %777 : vector<8x128xi1>
    %cst_62 = arith.constant 0.000000e+00 : f32
    %779 = vector.broadcast %cst_62 : f32 to vector<8x128xf32>
    %780 = arith.cmpf oge, %773, %779 : vector<8x128xf32>
    %781 = arith.andi %778, %780 : vector<8x128xi1>
    %782 = arith.ori %743, %781 : vector<8x128xi1>
    %783 = arith.extui %782 : vector<8x128xi1> to vector<8x128xi32>
    %784 = arith.sitofp %783 : vector<8x128xi32> to vector<8x128xf32>
    %c0_63 = arith.constant 0 : index
    %c0_64 = arith.constant 0 : index
    %785 = vector.load %arg3[%c0_63, %c0_64] : memref<8x128xf32, #tpu.memory_space<vmem>>, vector<8x128xf32>
    %786 = arith.subf %784, %785 : vector<8x128xf32>
    %787 = arith.mulf %786, %786 : vector<8x128xf32>
    %788 = vector.shape_cast %787 : vector<8x128xf32> to vector<1x8x128xf32>
    %cst_65 = arith.constant dense<0.000000e+00> : vector<1xf32>
    %789 = vector.multi_reduction <add>, %788, %cst_65 [1, 2] : vector<1x8x128xf32> to vector<1xf32>
    %790 = vector.shape_cast %789 : vector<1xf32> to vector<1x1x1xf32>
    %791 = vector.extract %790[0, 0, 0] : f32 from vector<1x1x1xf32>
    %c0_66 = arith.constant 0 : index
    %c0_67 = arith.constant 0 : index
    %792 = memref.load %arg4[%c0_66, %c0_67] : memref<1x1xf32, #tpu.memory_space<smem>>
    memref.store %791, %arg4[%c0_66, %c0_67] : memref<1x1xf32, #tpu.memory_space<smem>>
    return
  }
}

</mosaic_0001>

<bundles_post_ra>
// kernel: tpu_custom_call.1
= control target key start
LH: loop header
LB: loop body
LE: loop exit
PB: predicated region body
PF: predicated region fallthrough
CT: control target
= control target key end

     0   :  { %9 = vsyncpa [#allocation4], 0  ;;  %s2327_s0 = inlined_call_operand.hbm [shape: f32[180], index: 0, kind: input, shape index: {}]   ;;  %s2328_s1 = inlined_call_operand.hbm [shape: f32[8,128], index: 1, kind: input, shape index: {}]   ;;  %s2329_s2 = inlined_call_operand.hbm [shape: f32[8,128], index: 2, kind: input, shape index: {}]   ;;  %s2330_s3 = inlined_call_operand.vmem [shape: f32[8,128], index: 3, kind: input, shape index: {}]   ;;  %s2331_s4 = inlined_call_operand.hbm [shape: f32[1,1], index: 4, kind: output, shape index: {}]  }
   0x1   :  { %10 = vsyncpa [#allocation3], 0 }
   0x2   :  { %11 = vsyncpa [#allocation8], 0 }
   0x3   :  { %12 = vsyncpa [#allocation5], 0  ;;  %s995_s17 = scalar_lea.hbm %s2327_s0, 32 }
   0x4   :  { %p996_p0 = scmp.ne.s32.totalorder %s2327_s0, %s995_s17  ;;  %p999_p1 = scmp.lt.u32.totalorder %s995_s17, %s2327_s0 }
   0x6   :  { %p1001_p2 = pnand %p999_p1, %p996_p0 }
   0x8   :  { %1004 = shalt.err (!%p1001_p2)
}
   0x9   :  { %s1067_s22 = smov [#allocation2]   ;;  %s1068_s25 = smov [#allocation6]  }
   0xa   :  { %20 = dma.hbm_to_smem %s2327_s0, 32, %s1067_s22, [#allocation4]  }
   0xb   :  { %s27_s26 = sshll.u32 %s1068_s25, 4  ;;  %s1069_s27 = smov [#allocation7]   ;;  %s28_s26 = int_to_ptr.vmem [resolvable:$true] %s27_s26 }
   0xc   :  { %s37_s28 = sshll.u32 %s1069_s27, 4  ;;  %s1005_s5 = scalar_lea.hbm %s2328_s1, 128  ;;  %s38_s28 = int_to_ptr.vmem [resolvable:$true] %s37_s28 }
   0xd   :  { %p1006_p3 = scmp.ne.s32.totalorder %s2328_s1, %s1005_s5  ;;  %p1009_p4 = scmp.lt.u32.totalorder %s1005_s5, %s2328_s1 }
   0xf   :  { %p1011_p5 = pnand %p1009_p4, %p1006_p3 }
  0x11   :  { %1014 = shalt.err (!%p1011_p5)
}
  0x12   :  { %s1015_s0 = scalar_lea.vmem %s28_s26, 128  ;;  %p1020_p7 = scmp.lt.s32.totalorder %s28_s26, %s28_s26 }
  0x13   :  { %p1016_p6 = scmp.ne.s32.totalorder %s28_s26, %s1015_s0  ;;  %p1021_p8 = scmp.lt.s32.totalorder %s1015_s0, %s1015_s0 }
  0x15   :  { %p1022_p9 = por %p1021_p8, %p1020_p7 }
  0x17   :  { %p1023_p10 = pnand %p1022_p9, %p1016_p6 }
  0x19   :  { %1026 = shalt.err (!%p1023_p10)
}
  0x1a   :  { %30 = dma.hbm_to_vmem [thread:$0]  %s2328_s1, 128, %s28_s26, [#allocation3]  }
  0x1b   :  { %s1027_s14 = scalar_lea.hbm %s2329_s2, 128 }
  0x1c   :  { %p1028_p11 = scmp.ne.s32.totalorder %s2329_s2, %s1027_s14  ;;  %p1031_p12 = scmp.lt.u32.totalorder %s1027_s14, %s2329_s2 }
  0x1e   :  { %p1033_p13 = pnand %p1031_p12, %p1028_p11 }
  0x20   :  { %1036 = shalt.err (!%p1033_p13)
}
  0x21   :  { %s1037_s19 = scalar_lea.vmem %s38_s28, 128  ;;  %p1042_p1 = scmp.lt.s32.totalorder %s38_s28, %s38_s28 }
  0x22   :  { %p1038_p0 = scmp.ne.s32.totalorder %s38_s28, %s1037_s19  ;;  %p1043_p2 = scmp.lt.s32.totalorder %s1037_s19, %s1037_s19 }
  0x24   :  { %p1044_p3 = por %p1043_p2, %p1042_p1 }
  0x26   :  { %p1045_p4 = pnand %p1044_p3, %p1038_p0 }
  0x28   :  { %1048 = shalt.err (!%p1045_p4)
}
  0x29   :  { %40 = dma.hbm_to_vmem [thread:$0]  %s2329_s2, 128, %s38_s28, [#allocation8]  }
  0x2a   :  { %1059 = dma.done.wait [#allocation4], 32  }
  0x2b   :  { %1060 = vsyncadd [#allocation4], 4294967264 }
  0x2c   :  { %1061 = dma.done.wait [#allocation3], 128  }
  0x2d   :  { %1062 = vsyncadd [#allocation3], 4294967168 }
  0x2e   :  { %1063 = dma.done.wait [#allocation8], 128  }
  0x2f   :  { %1064 = vsyncadd [#allocation8], 4294967168 }
  0x30   :  { %52 = sfence }
  0x31   :  { %s55_s21 = sld [smem:[#allocation2]]  ;;  %s806_s22 = sld [smem:[#allocation2 + $0x1]]  ;;  %v1139_v0 = vld [vmem:[#allocation6] sm:$0xff]  ;;  %v1141_v1 = vld [vmem:[#allocation7] sm:$0xff] }
  0x32   :  { %s808_s23 = sld [smem:[#allocation2 + $0x3]]  ;;  %s809_s24 = sld [smem:[#allocation2 + $0x4]] }
  0x33   :  { %s811_s25 = sld [smem:[#allocation2 + $0x6]]  ;;  %s812_s26 = sld [smem:[#allocation2 + $0x7]] }
  0x34   :  { %s814_s27 = sld [smem:[#allocation2 + $0x9]]  ;;  %s815_s29 = sld [smem:[#allocation2 + $0xa]] }
  0x35   :  { %s1133_s30 = sld [smem:[#allocation2 + $0xc]]  ;;  %s1135_s5 = sld [smem:[#allocation2 + $0xd]] }
  0x36   :  { %s1137_s2 = sld [smem:[#allocation2 + $0x2]]  ;;  %s1143_s28 = sld [smem:[#allocation2 + $0x5]] }
  0x37   :  { %v56_v2 = vstv %s55_s21  ;;  %v59_v3 = vstv %s806_s22  ;;  %s1145_s6 = sld [smem:[#allocation2 + $0x8]]  ;;  %s1147_s7 = sld [smem:[#allocation2 + $0xb]] }
  0x38   :  { %v66_v4 = vstv %s808_s23  ;;  %v69_v5 = vstv %s809_s24  ;;  %s1149_s8 = sld [smem:[#allocation2 + $0xe]]  ;;  %s1151_s9 = sld [smem:[#allocation2 + $0xf]]  ;;  %v57_v10 = vmul.f32 %v56_v2, %v1139_v0  ;;  %v60_v11 = vmul.f32 %v59_v3, %v1141_v1 }
  0x39   :  { %v76_v6 = vstv %s811_s25  ;;  %v79_v7 = vstv %s812_s26  ;;  %s1155_s0 = sld [smem:[#allocation2 + $0x10]]  ;;  %s1157_s10 = sld [smem:[#allocation2 + $0x11]]  ;;  %v67_v12 = vmul.f32 %v66_v4, %v1139_v0  ;;  %v70_v13 = vmul.f32 %v69_v5, %v1141_v1 }
  0x3a   :  { %v91_v8 = vstv %s814_s27  ;;  %v94_v9 = vstv %s815_s29  ;;  %v77_v14 = vmul.f32 %v76_v6, %v1139_v0  ;;  %v80_v15 = vmul.f32 %v79_v7, %v1141_v1  ;;  %s1163_s11 = sld [smem:[#allocation2 + $0x12]]  ;;  %s1165_s12 = sld [smem:[#allocation2 + $0x13]] }
  0x3b   :  { %v92_v16 = vmul.f32 %v91_v8, %v1139_v0  ;;  %v95_v17 = vmul.f32 %v94_v9, %v1141_v1  ;;  %s1169_s13 = sld [smem:[#allocation2 + $0x15]]  ;;  %s1171_s14 = sld [smem:[#allocation2 + $0x16]]  ;;  %v101_v18 = vstv %s1133_s30  ;;  %v104_v19 = vstv %s1135_s5 }
  0x3c   :  { %s1175_s15 = sld [smem:[#allocation2 + $0x18]]  ;;  %s1177_s16 = sld [smem:[#allocation2 + $0x19]]  ;;  %v63_v20 = vstv %s1137_s2  ;;  %v61_v21 = vadd.f32 %v60_v11, %v57_v10  ;;  %v71_v22 = vadd.f32 %v70_v13, %v67_v12  ;;  %v73_v23 = vstv %s1143_s28 }
  0x3d   :  { %s1180_s17 = sld [smem:[#allocation2 + $0x1b]]  ;;  %s1182_s18 = sld [smem:[#allocation2 + $0x1c]]  ;;  %v81_v24 = vadd.f32 %v80_v15, %v77_v14  ;;  %v83_v25 = vstv %s1145_s6  ;;  %v96_v26 = vadd.f32 %v95_v17, %v92_v16  ;;  %v102_v27 = vmul.f32 %v101_v18, %v1139_v0 }
  0x3e   :  { %s1185_s19 = sld [smem:[#allocation2 + $0x1e]]  ;;  %s1187_s1 = sld [smem:[#allocation2 + $0x1f]]  ;;  %v105_v28 = vmul.f32 %v104_v19, %v1141_v1  ;;  %v98_v29 = vstv %s1147_s7  ;;  %v111_v30 = vstv %s1151_s9  ;;  %v1201_v32 = vadd.f32 %v63_v20, %v61_v21 }
  0x3f   :  { %s1192_s20 = sld [smem:[#allocation2 + $0x21]]  ;;  %s1194_s21 = sld [smem:[#allocation2 + $0x22]]  ;;  %v114_v31 = vstv %s1155_s0  ;;  %v1203_v33 = vadd.f32 %v73_v23, %v71_v22  ;;  %v1205_v34 = vadd.f32 %v83_v25, %v81_v24  ;;  %v1211_v35 = vadd.f32 %v98_v29, %v96_v26 }
  0x40   :  { %s1199_s22 = sld [smem:[#allocation2 + $0x14]]  ;;  %s1209_s24 = sld [smem:[#allocation2 + $0x25]]  ;;  %v1213_v36 = vadd.f32 %v105_v28, %v102_v27  ;;  %v108_v37 = vstv %s1149_s8  ;;  %v118_v38 = vstv %s1157_s10  ;;  %v112_v39 = vmul.f32 %v111_v30, %v1139_v0 }
  0x41   :  { %s1207_s23 = sld [smem:[#allocation2 + $0x24]]  ;;  %s1217_s25 = sld [smem:[#allocation2 + $0x17]]  ;;  %v115_v40 = vmul.f32 %v114_v31, %v1141_v1  ;;  %v127_v41 = vstv %s1163_s11  ;;  %v130_v42 = vstv %s1165_s12  ;;  %v137_v43 = vstv %s1169_s13 }
  0x42   :  { %s1219_s26 = sld [smem:[#allocation2 + $0x1a]]  ;;  %s1225_s27 = sld [smem:[#allocation2 + $0x27]]  ;;  %v140_v44 = vstv %s1171_s14  ;;  %v147_v45 = vstv %s1175_s15  ;;  %v150_v46 = vstv %s1177_s16  ;;  %v128_v51 = vmul.f32 %v127_v41, %v1139_v0 }
  0x43   :  { %s1227_s29 = sld [smem:[#allocation2 + $0x28]]  ;;  %v163_v47 = vstv %s1180_s17  ;;  %v166_v48 = vstv %s1182_s18  ;;  %s1235_s30 = sld [smem:[#allocation2 + $0x1d]]  ;;  %v131_v52 = vmul.f32 %v130_v42, %v1141_v1  ;;  %v138_v55 = vmul.f32 %v137_v43, %v1139_v0 }
  0x44   :  { %v173_v49 = vstv %s1185_s19  ;;  %v176_v50 = vstv %s1187_s1  ;;  %s1239_s5 = sld [smem:[#allocation2 + $0x20]]  ;;  %s1245_s2 = sld [smem:[#allocation2 + $0x2a]]  ;;  %v141_v56 = vmul.f32 %v140_v44, %v1141_v1  ;;  %v148_v57 = vmul.f32 %v147_v45, %v1139_v0 }
  0x45   :  { %v183_v53 = vstv %s1192_s20  ;;  %v186_v54 = vstv %s1194_s21  ;;  %s1247_s28 = sld [smem:[#allocation2 + $0x2b]]  ;;  %v151_v58 = vmul.f32 %v150_v46, %v1141_v1  ;;  %v164_v59 = vmul.f32 %v163_v47, %v1139_v0  ;;  %s1259_s7 = sld [smem:[#allocation2 + $0x26]] }
  0x46   :  { %s1253_s6 = sld [smem:[#allocation2 + $0x23]]  ;;  %v167_v60 = vmul.f32 %v166_v48, %v1141_v1  ;;  %v174_v61 = vmul.f32 %v173_v49, %v1139_v0  ;;  %v177_v62 = vmul.f32 %v176_v50, %v1141_v1  ;;  %s1261_s9 = sld [smem:[#allocation2 + $0x29]]  ;;  %v184_v63 = vmul.f32 %v183_v53, %v1139_v0 }
  0x47   :  { %v187_v2 = vmul.f32 %v186_v54, %v1141_v1  ;;  %v199_v3 = vstv %s1207_s23  ;;  %v202_v4 = vstv %s1209_s24  ;;  %s1267_s0 = sld [smem:[#allocation2 + $0x2c]]  ;;  %s1269_s11 = sld [smem:[#allocation2 + $0x2d]]  ;;  %v116_v5 = vadd.f32 %v115_v40, %v112_v39 }
  0x48   :  { %v132_v6 = vadd.f32 %v131_v52, %v128_v51  ;;  %v134_v7 = vstv %s1199_s22  ;;  %v144_v8 = vstv %s1217_s25  ;;  %s1273_s12 = sld [smem:[#allocation2 + $0x2e]]  ;;  %s1275_s13 = sld [smem:[#allocation2 + $0x2f]]  ;;  %v142_v9 = vadd.f32 %v141_v56, %v138_v55 }
  0x49   :  { %v154_v10 = vstv %s1219_s26  ;;  %v209_v11 = vstv %s1225_s27  ;;  %v212_v12 = vstv %s1227_s29  ;;  %s1280_s14 = sld [smem:[#allocation2 + $0x30]]  ;;  %s1282_s15 = sld [smem:[#allocation2 + $0x31]]  ;;  %v152_v13 = vadd.f32 %v151_v58, %v148_v57 }
  0x4a   :  { %v168_v14 = vadd.f32 %v167_v60, %v164_v59  ;;  %v200_v15 = vmul.f32 %v199_v3, %v1139_v0  ;;  %v203_v16 = vmul.f32 %v202_v4, %v1141_v1  ;;  %s1286_s16 = sld [smem:[#allocation2 + $0x33]]  ;;  %s1288_s17 = sld [smem:[#allocation2 + $0x34]]  ;;  %v170_v17 = vstv %s1235_s30 }
  0x4b   :  { %v178_v18 = vadd.f32 %v177_v62, %v174_v61  ;;  %v180_v19 = vstv %s1239_s5  ;;  %v188_v20 = vadd.f32 %v187_v2, %v184_v63  ;;  %s1292_s18 = sld [smem:[#allocation2 + $0x36]]  ;;  %s1294_s19 = sld [smem:[#allocation2 + $0x37]]  ;;  %v210_v21 = vmul.f32 %v209_v11, %v1139_v0 }
  0x4c   :  { %v213_v22 = vmul.f32 %v212_v12, %v1141_v1  ;;  %v219_v23 = vstv %s1245_s2  ;;  %v222_v24 = vstv %s1247_s28  ;;  %s1300_s1 = sld [smem:[#allocation2 + $0x32]]  ;;  %v1305_v25 = vadd.f32 %v108_v37, %v1213_v36  ;;  %s1314_s20 = sld [smem:[#allocation2 + $0x39]] }
  0x4d   :  { %v1309_v26 = vadd.f32 %v118_v38, %v116_v5  ;;  %v1311_v27 = vadd.f32 %v134_v7, %v132_v6  ;;  %v190_v28 = vstv %s1253_s6  ;;  %s1316_s21 = sld [smem:[#allocation2 + $0x3a]]  ;;  %v1318_v29 = vadd.f32 %v144_v8, %v142_v9  ;;  %s1324_s8 = sld [smem:[#allocation2 + $0x3c]] }
  0x4e   :  { %v1320_v30 = vadd.f32 %v154_v10, %v152_v13  ;;  %v1322_v31 = vadd.f32 %v170_v17, %v168_v14  ;;  %v204_v36 = vadd.f32 %v203_v16, %v200_v15  ;;  %s1326_s10 = sld [smem:[#allocation2 + $0x3d]]  ;;  %v1328_v37 = vadd.f32 %v180_v19, %v178_v18  ;;  %s1333_s22 = sld [smem:[#allocation2 + $0x3f]] }
  0x4f   :  { %v206_v38 = vstv %s1259_s7  ;;  %v220_v39 = vmul.f32 %v219_v23, %v1139_v0  ;;  %v223_v40 = vmul.f32 %v222_v24, %v1141_v1  ;;  %s1335_s23 = sld [smem:[#allocation2 + $0x40]]  ;;  %v1337_v41 = vadd.f32 %v190_v28, %v188_v20  ;;  %s1345_s24 = sld [smem:[#allocation2 + $0x42]] }
  0x50   :  { %v214_v42 = vadd.f32 %v213_v22, %v210_v21  ;;  %v216_v43 = vstv %s1261_s9  ;;  %v235_v44 = vstv %s1269_s11  ;;  %v226_v45 = vstv %s1267_s0  ;;  %s1347_s25 = sld [smem:[#allocation2 + $0x43]]  ;;  %s1361_s26 = sld [smem:[#allocation2 + $0x45]] }
  0x51   :  { %v238_v46 = vstv %s1273_s12  ;;  %v245_v47 = vstv %s1280_s14  ;;  %v248_v48 = vstv %s1282_s15  ;;  %vm85_vm0 = vcmp.ge.f32.partialorder %v1201_v32, 0.0  ;;  %s1363_s27 = sld [smem:[#allocation2 + $0x46]]  ;;  %s1370_s29 = sld [smem:[#allocation2 + $0x35]] }
  0x52   :  { %vm86_vm1 = vcmp.ge.f32.partialorder %v1203_v33, 0.0  ;;  %v1351_v49 = vadd.f32 %v206_v38, %v204_v36  ;;  %v242_v50 = vstv %s1275_s13  ;;  %v255_v51 = vstv %s1286_s16  ;;  %s1372_s30 = sld [smem:[#allocation2 + $0x38]]  ;;  %s1381_s2 = sld [smem:[#allocation2 + $0x49]] }
  0x53   :  { %v258_v52 = vstv %s1288_s17  ;;  %vm120_vm2 = vcmp.ge.f32.partialorder %v1211_v35, 0.0  ;;  %vm121_vm3 = vcmp.ge.f32.partialorder %v1305_v25, 0.0  ;;  %v224_v53 = vadd.f32 %v223_v40, %v220_v39  ;;  %s1379_s5 = sld [smem:[#allocation2 + $0x48]]  ;;  %s1386_s28 = sld [smem:[#allocation2 + $0x3b]]  ;;  %vm1446_vm11 = vmand %vm85_vm0, %vm86_vm1 }
  0x54   :  { %v236_v54 = vmul.f32 %v235_v44, %v1139_v0  ;;  %v271_v55 = vstv %s1292_s18  ;;  %v274_v56 = vstv %s1294_s19  ;;  %v1365_v57 = vadd.f32 %v216_v43, %v214_v42  ;;  %s1390_s6 = sld [smem:[#allocation2 + $0x3e]]  ;;  %s1399_s7 = sld [smem:[#allocation2 + $0x41]]  ;;  %vm1460_vm12 = vmand %vm120_vm2, %vm121_vm3 }
  0x55   :  { %v239_v58 = vmul.f32 %v238_v46, %v1141_v1  ;;  %v246_v59 = vmul.f32 %v245_v47, %v1139_v0  ;;  %v249_v60 = vmul.f32 %v248_v48, %v1141_v1  ;;  %vm88_vm4 = vcmp.ge.f32.partialorder %v1205_v34, 0.0  ;;  %s1403_s9 = sld [smem:[#allocation2 + $0x4b]]  ;;  %s1405_s0 = sld [smem:[#allocation2 + $0x4c]] }
  0x56   :  { %v256_v61 = vmul.f32 %v255_v51, %v1139_v0  ;;  %v259_v62 = vmul.f32 %v258_v52, %v1141_v1  ;;  %v281_v63 = vstv %s1314_s20  ;;  %v284_v2 = vstv %s1316_s21  ;;  %s1411_s11 = sld [smem:[#allocation2 + $0x44]]  ;;  %s1413_s12 = sld [smem:[#allocation2 + $0x47]]  ;;  %vm1487_vm0 = vmand %vm1446_vm11, %vm88_vm4 }
  0x57   :  { %vm123_vm5 = vcmp.ge.f32.partialorder %v1309_v26, 0.0  ;;  %v272_v3 = vmul.f32 %v271_v55, %v1139_v0  ;;  %v275_v4 = vmul.f32 %v274_v56, %v1141_v1  ;;  %v291_v5 = vstv %s1324_s8  ;;  %s1418_s14 = sld [smem:[#allocation2 + $0x4e]]  ;;  %s1420_s15 = sld [smem:[#allocation2 + $0x4f]] }
  0x58   :  { %v294_v6 = vstv %s1326_s10  ;;  %vm156_vm6 = vcmp.ge.f32.partialorder %v1311_v27, 0.0  ;;  %vm157_vm7 = vcmp.ge.f32.partialorder %v1318_v29, 0.0  ;;  %v1394_v7 = vadd.f32 %v226_v45, %v224_v53  ;;  %s1428_s16 = sld [smem:[#allocation2 + $0x51]]  ;;  %s1430_s17 = sld [smem:[#allocation2 + $0x52]]  ;;  %vm1499_vm1 = vmand %vm1460_vm12, %vm123_vm5 }
  0x59   :  { %v252_v8 = vstv %s1300_s1  ;;  %v307_v9 = vstv %s1333_s22  ;;  %v310_v10 = vstv %s1335_s23  ;;  %v240_v11 = vadd.f32 %v239_v58, %v236_v54  ;;  %s1440_s18 = sld [smem:[#allocation2 + $0x4a]]  ;;  %s1452_s13 = sld [smem:[#allocation2 + $0x54]]  ;;  %vm1517_vm2 = vmand %vm156_vm6, %vm157_vm7 }
  0x5a   :  { %v250_v12 = vadd.f32 %v249_v60, %v246_v59  ;;  %v282_v13 = vmul.f32 %v281_v63, %v1139_v0  ;;  %v285_v14 = vmul.f32 %v284_v2, %v1141_v1  ;;  %v292_v15 = vmul.f32 %v291_v5, %v1139_v0  ;;  %s1454_s19 = sld [smem:[#allocation2 + $0x55]]  ;;  %s1471_s20 = sld [smem:[#allocation2 + $0x50]]  ;;  %vm125_vm6 = vmor %vm1487_vm0, %vm1499_vm1 }
  0x5b   :  { %v295_v16 = vmul.f32 %v294_v6, %v1141_v1  ;;  %v317_v17 = vstv %s1345_s24  ;;  %v320_v18 = vstv %s1347_s25  ;;  %vm159_vm8 = vcmp.ge.f32.partialorder %v1320_v30, 0.0  ;;  %s1469_s1 = sld [smem:[#allocation2 + $0x4d]]  ;;  %s1479_s21 = sld [smem:[#allocation2 + $0x57]] }
  0x5c   :  { %v260_v19 = vadd.f32 %v259_v62, %v256_v61  ;;  %v276_v20 = vadd.f32 %v275_v4, %v272_v3  ;;  %v308_v21 = vmul.f32 %v307_v9, %v1139_v0  ;;  %v311_v22 = vmul.f32 %v310_v10, %v1141_v1  ;;  %s1481_s8 = sld [smem:[#allocation2 + $0x58]]  ;;  %s1509_s10 = sld [smem:[#allocation2 + $0x5a]]  ;;  %vm1554_vm7 = vmand %vm1517_vm2, %vm159_vm8 }
  0x5d   :  { %vm192_vm9 = vcmp.ge.f32.partialorder %v1322_v31, 0.0  ;;  %vm193_vm10 = vcmp.ge.f32.partialorder %v1328_v37, 0.0  ;;  %v318_v23 = vmul.f32 %v317_v17, %v1139_v0  ;;  %v321_v24 = vmul.f32 %v320_v18, %v1141_v1  ;;  %s1511_s22 = sld [smem:[#allocation2 + $0x5b]]  ;;  %s1527_s24 = sld [smem:[#allocation2 + $0x56]] }
  0x5e   :  { %v327_v28 = vstv %s1361_s26  ;;  %v330_v36 = vstv %s1363_s27  ;;  %v1434_v38 = vadd.f32 %v242_v50, %v240_v11  ;;  %v1436_v39 = vadd.f32 %v252_v8, %v250_v12  ;;  %s1525_s23 = sld [smem:[#allocation2 + $0x53]]  ;;  %s1535_s25 = sld [smem:[#allocation2 + $0x5d]]  ;;  %vm1570_vm8 = vmand %vm192_vm9, %vm193_vm10 }
  0x5f   :  { %v262_v40 = vstv %s1370_s29  ;;  %v278_v42 = vstv %s1372_s30  ;;  %v286_v44 = vadd.f32 %v285_v14, %v282_v13  ;;  %v296_v45 = vadd.f32 %v295_v16, %v292_v15  ;;  %s1537_s26 = sld [smem:[#allocation2 + $0x5e]]  ;;  %s1548_s27 = sld [smem:[#allocation2 + $0x59]]  ;;  %vm1598_vm9 = vmor %vm125_vm6, %vm1554_vm7 }
  0x60   :  { %v343_v46 = vstv %s1379_s5  ;;  %v346_v47 = vstv %s1381_s2  ;;  %vm195_vm13 = vcmp.ge.f32.partialorder %v1337_v41, 0.0  ;;  %v288_v32 = vstv %s1386_s28  ;;  %s1562_s29 = sld [smem:[#allocation2 + $0x60]]  ;;  %s1564_s30 = sld [smem:[#allocation2 + $0x61]] }
  0x61   :  { %v298_v48 = vstv %s1390_s6  ;;  %v328_v50 = vmul.f32 %v327_v28, %v1139_v0  ;;  %v331_v51 = vmul.f32 %v330_v36, %v1141_v1  ;;  %vm228_vm14 = vcmp.ge.f32.partialorder %v1351_v49, 0.0  ;;  %s1580_s5 = sld [smem:[#allocation2 + $0x5c]]  ;;  %s1587_s2 = sld [smem:[#allocation2 + $0x63]]  ;;  %vm1615_vm10 = vmand %vm1570_vm8, %vm195_vm13 }
  0x62   :  { %vm229_vm15 = vcmp.ge.f32.partialorder %v1365_v57, 0.0  ;;  %v1475_v35 = vadd.f32 %v262_v40, %v260_v19  ;;  %v1477_v25 = vadd.f32 %v278_v42, %v276_v20  ;;  %v312_v52 = vadd.f32 %v311_v22, %v308_v21  ;;  %s1589_s28 = sld [smem:[#allocation2 + $0x64]]  ;;  %s1607_s6 = sld [smem:[#allocation2 + $0x5f]] }
  0x63   :  { %v322_v53 = vadd.f32 %v321_v24, %v318_v23  ;;  %v344_v55 = vmul.f32 %v343_v46, %v1139_v0  ;;  %v347_v56 = vmul.f32 %v346_v47, %v1141_v1  ;;  %v353_v58 = vstv %s1403_s9  ;;  %s1622_s9 = sld [smem:[#allocation2 + $0x66]]  ;;  %vm1630_vm13 = vmand %vm228_vm14, %vm229_vm15 }
  0x64   :  { %v356_v59 = vstv %s1405_s0  ;;  %v1503_v60 = vadd.f32 %v288_v32, %v286_v44  ;;  %v1505_v61 = vadd.f32 %v298_v48, %v296_v45  ;;  %v314_v62 = vstv %s1399_s7  ;;  %s1609_s7 = sld [smem:[#allocation2 + $0x62]]  ;;  %s1624_s0 = sld [smem:[#allocation2 + $0x67]]  ;;  %vm197_vm14 = vmor %vm1598_vm9, %vm1615_vm10 }
  0x65   :  { %v324_v63 = vstv %s1411_s11  ;;  %vm231_vm3 = vcmp.ge.f32.partialorder %v1394_v7, 0.0  ;;  %v332_v2 = vadd.f32 %v331_v51, %v328_v50  ;;  %v334_v3 = vstv %s1413_s12  ;;  %s1645_s11 = sld [smem:[#allocation2 + $0x69]]  ;;  %s1647_s12 = sld [smem:[#allocation2 + $0x6a]] }
  0x66   :  { %v363_v4 = vstv %s1418_s14  ;;  %v366_v5 = vstv %s1420_s15  ;;  %vm264_vm4 = vcmp.ge.f32.partialorder %v1434_v38, 0.0  ;;  %vm265_vm5 = vcmp.ge.f32.partialorder %v1436_v39, 0.0  ;;  %s1655_s14 = sld [smem:[#allocation2 + $0x65]]  ;;  %s1657_s15 = sld [smem:[#allocation2 + $0x68]]  ;;  %vm1663_vm15 = vmand %vm1630_vm13, %vm231_vm3 }
  0x67   :  { %v354_v27 = vmul.f32 %v353_v58, %v1139_v0  ;;  %v357_v29 = vmul.f32 %v356_v59, %v1141_v1  ;;  %v379_v6 = vstv %s1428_s16  ;;  %v382_v8 = vstv %s1430_s17  ;;  %s1672_s16 = sld [smem:[#allocation2 + $0x6c]]  ;;  %s1674_s17 = sld [smem:[#allocation2 + $0x6d]]  ;;  %vm1680_vm3 = vmand %vm264_vm4, %vm265_vm5 }
  0x68   :  { %v1543_v9 = vadd.f32 %v314_v62, %v312_v52  ;;  %v1545_v10 = vadd.f32 %v324_v63, %v322_v53  ;;  %v348_v11 = vadd.f32 %v347_v56, %v344_v55  ;;  %v350_v12 = vstv %s1440_s18  ;;  %s1689_s18 = sld [smem:[#allocation2 + $0x6b]]  ;;  %vm1707_vm5 = vmor %vm197_vm14, %vm1663_vm15 }
  0x69   :  { %v364_v14 = vmul.f32 %v363_v4, %v1139_v0  ;;  %v367_v15 = vmul.f32 %v366_v5, %v1141_v1  ;;  %v389_v16 = vstv %s1452_s13  ;;  %v392_v17 = vstv %s1454_s19  ;;  %s1696_s13 = sld [smem:[#allocation2 + $0x6f]]  ;;  %s1698_s19 = sld [smem:[#allocation2 + $0x70]] }
  0x6a   :  { %vm267_vm11 = vcmp.ge.f32.partialorder %v1475_v35, 0.0  ;;  %v1575_v18 = vadd.f32 %v334_v3, %v332_v2  ;;  %v360_v19 = vstv %s1469_s1  ;;  %v380_v20 = vmul.f32 %v379_v6, %v1139_v0  ;;  %s1717_s1 = sld [smem:[#allocation2 + $0x6e]] }
  0x6b   :  { %v383_v21 = vmul.f32 %v382_v8, %v1141_v1  ;;  %vm300_vm12 = vcmp.ge.f32.partialorder %v1477_v25, 0.0  ;;  %vm301_vm2 = vcmp.ge.f32.partialorder %v1503_v60, 0.0  ;;  %v358_v31 = vadd.f32 %v357_v29, %v354_v27  ;;  %vm1725_vm9 = vmand %vm1680_vm3, %vm267_vm11 }
  0x6c   :  { %v370_v37 = vstv %s1471_s20  ;;  %v399_v22 = vstv %s1479_s21  ;;  %v402_v23 = vstv %s1481_s8  ;;  %v1602_v28 = vadd.f32 %v350_v12, %v348_v11  ;;  %s1719_s20 = sld [smem:[#allocation2 + $0x71]]  ;;  %s1733_s21 = sld [smem:[#allocation2 + $0x72]]  ;;  %vm1741_vm11 = vmand %vm300_vm12, %vm301_vm2 }
  0x6d   :  { %v390_v36 = vmul.f32 %v389_v16, %v1139_v0  ;;  %v393_v40 = vmul.f32 %v392_v17, %v1141_v1  ;;  %v400_v42 = vmul.f32 %v399_v22, %v1139_v0  ;;  %v368_v44 = vadd.f32 %v367_v15, %v364_v14  ;;  %s1735_s8 = sld [smem:[#allocation2 + $0x73]]  ;;  %vm269_vm12 = vmor %vm1707_vm5, %vm1725_vm9 }
  0x6e   :  { %v403_v45 = vmul.f32 %v402_v23, %v1141_v1  ;;  %v415_v46 = vstv %s1509_s10  ;;  %v418_v47 = vstv %s1511_s22  ;;  %vm303_vm0 = vcmp.ge.f32.partialorder %v1505_v61, 0.0  ;;  %s1750_s10 = sld [smem:[#allocation2 + $0x74]]  ;;  %s1757_s22 = sld [smem:[#allocation2 + $0x75]] }
  0x6f   :  { %v384_v33 = vadd.f32 %v383_v21, %v380_v20  ;;  %v386_v32 = vstv %s1525_s23  ;;  %v416_v48 = vmul.f32 %v415_v46, %v1139_v0  ;;  %v419_v50 = vmul.f32 %v418_v47, %v1141_v1  ;;  %s1759_s23 = sld [smem:[#allocation2 + $0x76]]  ;;  %vm1774_vm2 = vmand %vm1741_vm11, %vm303_vm0 }
  0x70   :  { %vm336_vm1 = vcmp.ge.f32.partialorder %v1543_v9, 0.0  ;;  %vm337_vm6 = vcmp.ge.f32.partialorder %v1545_v10, 0.0  ;;  %v1640_v57 = vadd.f32 %v360_v19, %v358_v31  ;;  %v396_v49 = vstv %s1527_s24  ;;  %s1768_s24 = sld [smem:[#allocation2 + $0x77]] }
  0x71   :  { %v425_v51 = vstv %s1535_s25  ;;  %v428_v52 = vstv %s1537_s26  ;;  %v394_v53 = vadd.f32 %v393_v40, %v390_v36  ;;  %v404_v54 = vadd.f32 %v403_v45, %v400_v42  ;;  %s1782_s25 = sld [smem:[#allocation2 + $0x78]]  ;;  %s1784_s26 = sld [smem:[#allocation2 + $0x79]]  ;;  %vm1790_vm0 = vmand %vm336_vm1, %vm337_vm6 }
  0x72   :  { %v426_v55 = vmul.f32 %v425_v51, %v1139_v0  ;;  %v429_v56 = vmul.f32 %v428_v52, %v1141_v1  ;;  %v1667_v59 = vadd.f32 %v370_v37, %v368_v44  ;;  %v406_v34 = vstv %s1548_s27  ;;  %s1799_s27 = sld [smem:[#allocation2 + $0x7a]]  ;;  %vm1819_vm6 = vmor %vm269_vm12, %vm1774_vm2 }
  0x73   :  { %v435_v62 = vstv %s1562_s29  ;;  %v438_v63 = vstv %s1564_s30  ;;  %vm339_vm7 = vcmp.ge.f32.partialorder %v1575_v18, 0.0  ;;  %v1685_v26 = vadd.f32 %v386_v32, %v384_v33  ;;  %s1808_s29 = sld [smem:[#allocation2 + $0x7b]]  ;;  %s1810_s30 = sld [smem:[#allocation2 + $0x7c]] }
  0x74   :  { %v420_v2 = vadd.f32 %v419_v50, %v416_v48  ;;  %v436_v3 = vmul.f32 %v435_v62, %v1139_v0  ;;  %v439_v4 = vmul.f32 %v438_v63, %v1141_v1  ;;  %vm372_vm8 = vcmp.ge.f32.partialorder %v1602_v28, 0.0  ;;  %vm1833_vm11 = vmand %vm1790_vm0, %vm339_vm7  ;;  %v2011_v48 = vld [vmem:[#allocation6] sm:$0xff] }
  0x75   :  { %vm373_vm4 = vcmp.ge.f32.partialorder %v1640_v57, 0.0  ;;  %v422_v38 = vstv %s1580_s5  ;;  %v430_v39 = vadd.f32 %v429_v56, %v426_v55  ;;  %v451_v5 = vstv %s1587_s2  ;;  %s1827_s5 = sld [smem:[#allocation2 + $0x7d]]  ;;  %s1841_s2 = sld [smem:[#allocation2 + $0x7e]] }
  0x76   :  { %v454_v27 = vstv %s1589_s28  ;;  %v1711_v6 = vadd.f32 %v396_v49, %v394_v53  ;;  %v1713_v8 = vadd.f32 %v406_v34, %v404_v54  ;;  %v432_v11 = vstv %s1607_s6  ;;  %s1843_s28 = sld [smem:[#allocation2 + $0x7f]]  ;;  %vm1849_vm5 = vmand %vm372_vm8, %vm373_vm4  ;;  %s1859_s6 = sld [smem:[#allocation2 + $0x80]] }
  0x77   :  { %v452_v12 = vmul.f32 %v451_v5, %v1139_v0  ;;  %v442_v14 = vstv %s1609_s7  ;;  %v455_v15 = vmul.f32 %v454_v27, %v1141_v1  ;;  %v461_v16 = vstv %s1622_s9  ;;  %s1866_s7 = sld [smem:[#allocation2 + $0x81]]  ;;  %s1868_s9 = sld [smem:[#allocation2 + $0x82]]  ;;  %vm341_vm8 = vmor %vm1819_vm6, %vm1833_vm11 }
  0x78   :  { %v464_v17 = vstv %s1624_s0  ;;  %vm375_vm10 = vcmp.ge.f32.partialorder %v1667_v59, 0.0  ;;  %v1746_v30 = vadd.f32 %v422_v38, %v420_v2  ;;  %v440_v19 = vadd.f32 %v439_v4, %v436_v3  ;;  %s1877_s0 = sld [smem:[#allocation2 + $0x83]] }
  0x79   :  { %v462_v20 = vmul.f32 %v461_v16, %v1139_v0  ;;  %v465_v21 = vmul.f32 %v464_v17, %v1141_v1  ;;  %vm408_vm13 = vcmp.ge.f32.partialorder %v1685_v26, 0.0  ;;  %v1753_v25 = vadd.f32 %v432_v11, %v430_v39  ;;  %vm1883_vm12 = vmand %vm1849_vm5, %vm375_vm10 }
  0x7a   :  { %v456_v60 = vadd.f32 %v455_v15, %v452_v12  ;;  %v471_v31 = vstv %s1645_s11  ;;  %v474_v37 = vstv %s1647_s12  ;;  %v458_v22 = vstv %s1655_s14  ;;  %s1892_s11 = sld [smem:[#allocation2 + $0x84]]  ;;  %s1894_s12 = sld [smem:[#allocation2 + $0x85]] }
  0x7b   :  { %v466_v23 = vadd.f32 %v465_v21, %v462_v20  ;;  %v472_v24 = vmul.f32 %v471_v31, %v1139_v0  ;;  %v475_v36 = vmul.f32 %v474_v37, %v1141_v1  ;;  %vm409_vm14 = vcmp.ge.f32.partialorder %v1711_v6, 0.0  ;;  %s1909_s14 = sld [smem:[#allocation2 + $0x86]] }
  0x7c   :  { %v468_v42 = vstv %s1657_s15  ;;  %v487_v43 = vstv %s1672_s16  ;;  %v490_v44 = vstv %s1674_s17  ;;  %vm411_vm15 = vcmp.ge.f32.partialorder %v1713_v8, 0.0  ;;  %vm1900_vm2 = vmand %vm408_vm13, %vm409_vm14  ;;  %s1915_s15 = sld [smem:[#allocation2 + $0x87]]  ;;  %s1917_s16 = sld [smem:[#allocation2 + $0x88]] }
  0x7d   :  { %v1795_v45 = vadd.f32 %v442_v14, %v440_v19  ;;  %v476_v46 = vadd.f32 %v475_v36, %v472_v24  ;;  %v488_v47 = vmul.f32 %v487_v43, %v1139_v0  ;;  %v491_v41 = vmul.f32 %v490_v44, %v1141_v1  ;;  %vm1926_vm13 = vmor %vm341_vm8, %vm1883_vm12  ;;  %s1934_s17 = sld [smem:[#allocation2 + $0x89]] }
  0x7e   :  { %vm444_vm3 = vcmp.ge.f32.partialorder %v1746_v30, 0.0  ;;  %vm445_vm1 = vcmp.ge.f32.partialorder %v1753_v25, 0.0  ;;  %v1803_v9 = vadd.f32 %v458_v22, %v456_v60  ;;  %v478_v10 = vstv %s1689_s18  ;;  %vm1940_vm5 = vmand %vm1900_vm2, %vm411_vm15  ;;  %s1948_s18 = sld [smem:[#allocation2 + $0x8a]] }
  0x7f   :  { %v497_v33 = vstv %s1696_s13  ;;  %v500_v32 = vstv %s1698_s19  ;;  %v1823_v50 = vadd.f32 %v468_v42, %v466_v23  ;;  %v492_v49 = vadd.f32 %v491_v41, %v488_v47  ;;  %s1950_s13 = sld [smem:[#allocation2 + $0x8b]]  ;;  %vm1956_vm6 = vmand %vm444_vm3, %vm445_vm1  ;;  %s1966_s19 = sld [smem:[#allocation2 + $0x8c]] }
  0x80   :  { %v494_v51 = vstv %s1717_s1  ;;  %v498_v52 = vmul.f32 %v497_v33, %v1139_v0  ;;  %v501_v54 = vmul.f32 %v500_v32, %v1141_v1  ;;  %v504_v55 = vstv %s1719_s20  ;;  %s1971_s1 = sld [smem:[#allocation2 + $0x8d]]  ;;  %s1973_s20 = sld [smem:[#allocation2 + $0x8e]]  ;;  %vm413_vm1 = vmor %vm1926_vm13, %vm1940_vm5 }
  0x81   :  { %v507_v56 = vstv %s1733_s21  ;;  %v510_v58 = vstv %s1735_s8  ;;  %vm447_vm7 = vcmp.ge.f32.partialorder %v1795_v45, 0.0  ;;  %v1854_v34 = vadd.f32 %v478_v10, %v476_v46  ;;  %s1982_s21 = sld [smem:[#allocation2 + $0x8f]]  ;;  %s1997_s8 = sld [smem:[#allocation2 + $0x90]] }
  0x82   :  { %v508_v62 = vmul.f32 %v507_v56, %v1139_v0  ;;  %v511_v63 = vmul.f32 %v510_v58, %v1141_v1  ;;  %v514_v7 = vstv %s1750_s10  ;;  %vm480_vm9 = vcmp.ge.f32.partialorder %v1803_v9, 0.0  ;;  %vm1988_vm11 = vmand %vm1956_vm6, %vm447_vm7  ;;  %s1999_s10 = sld [smem:[#allocation2 + $0x91]] }
  0x83   :  { %v1862_v28 = vadd.f32 %v494_v51, %v492_v49  ;;  %v502_v57 = vadd.f32 %v501_v54, %v498_v52  ;;  %v523_v2 = vstv %s1757_s22  ;;  %v526_v3 = vstv %s1759_s23  ;;  %v2014_v51 = vld [vmem:[#allocation7] sm:$0xff]  ;;  %s2017_s22 = sld [smem:[#allocation2 + $0x92]]  ;;  %s2023_s23 = sld [smem:[#allocation2 + $0x93]] }
  0x84   :  { %vm481_vm4 = vcmp.ge.f32.partialorder %v1823_v50, 0.0  ;;  %v512_v4 = vadd.f32 %v511_v63, %v508_v62  ;;  %v524_v38 = vmul.f32 %v523_v2, %v1139_v0  ;;  %v527_v39 = vmul.f32 %v526_v3, %v1141_v1 }
  0x85   :  { %v1887_v27 = vadd.f32 %v504_v55, %v502_v57  ;;  %v530_v29 = vstv %s1768_s24  ;;  %v533_v11 = vstv %s1782_s25  ;;  %v536_v12 = vstv %s1784_s26  ;;  %vm2005_vm7 = vmand %vm480_vm9, %vm481_vm4  ;;  %s2025_s24 = sld [smem:[#allocation2 + $0x94]]  ;;  %s2040_s25 = sld [smem:[#allocation2 + $0x95]] }
  0x86   :  { %vm483_vm10 = vcmp.ge.f32.partialorder %v1854_v34, 0.0  ;;  %v1905_v13 = vadd.f32 %v514_v7, %v512_v4  ;;  %v528_v14 = vadd.f32 %v527_v39, %v524_v38  ;;  %v534_v15 = vmul.f32 %v533_v11, %v1139_v0  ;;  %vm2034_vm4 = vmor %vm413_vm1, %vm1988_vm11  ;;  %s2054_s26 = sld [smem:[#allocation2 + $0x96]] }
  0x87   :  { %v537_v16 = vmul.f32 %v536_v12, %v1141_v1  ;;  %vm516_vm0 = vcmp.ge.f32.partialorder %v1862_v28, 0.0  ;;  %v540_v26 = vstv %s1799_s27  ;;  %v543_v6 = vstv %s1808_s29  ;;  %vm2046_vm12 = vmand %vm2005_vm7, %vm483_vm10  ;;  %s2056_s27 = sld [smem:[#allocation2 + $0x97]]  ;;  %s2071_s29 = sld [smem:[#allocation2 + $0x98]] }
  0x88   :  { %v546_v17 = vstv %s1810_s30  ;;  %vm517_vm14 = vcmp.ge.f32.partialorder %v1887_v27, 0.0  ;;  %v1931_v19 = vadd.f32 %v530_v29, %v528_v14  ;;  %v544_v21 = vmul.f32 %v543_v6, %v1139_v0  ;;  %s2075_s30 = sld [smem:[#allocation2 + $0x99]] }
  0x89   :  { %v538_v20 = vadd.f32 %v537_v16, %v534_v15  ;;  %v547_v31 = vmul.f32 %v546_v17, %v1141_v1  ;;  %v550_v37 = vstv %s1827_s5  ;;  %v559_v22 = vstv %s1841_s2  ;;  %vm2062_vm13 = vmand %vm516_vm0, %vm517_vm14  ;;  %s2077_s5 = sld [smem:[#allocation2 + $0x9a]]  ;;  %s2086_s2 = sld [smem:[#allocation2 + $0x9b]] }
  0x8a   :  { %v562_v23 = vstv %s1843_s28  ;;  %vm519_vm15 = vcmp.ge.f32.partialorder %v1905_v13, 0.0  ;;  %v560_v36 = vmul.f32 %v559_v22, %v1139_v0  ;;  %v566_v42 = vstv %s1859_s6  ;;  %vm485_vm0 = vmor %vm2034_vm4, %vm2046_vm12  ;;  %s2099_s28 = sld [smem:[#allocation2 + $0x9c]]  ;;  %s2101_s6 = sld [smem:[#allocation2 + $0x9d]] }
  0x8b   :  { %v1961_v24 = vadd.f32 %v540_v26, %v538_v20  ;;  %v563_v40 = vmul.f32 %v562_v23, %v1141_v1  ;;  %v548_v25 = vadd.f32 %v547_v31, %v544_v21  ;;  %vm552_vm3 = vcmp.ge.f32.partialorder %v1931_v19, 0.0  ;;  %vm2092_vm14 = vmand %vm2062_vm13, %vm519_vm15 }
  0x8c   :  { %v569_v30 = vstv %s1866_s7  ;;  %v572_v43 = vstv %s1868_s9  ;;  %v576_v47 = vstv %s1877_s0  ;;  %v586_v9 = vstv %s1909_s14  ;;  %s2113_s7 = sld [smem:[#allocation2 + $0x9e]]  ;;  %s2118_s9 = sld [smem:[#allocation2 + $0x9f]] }
  0x8d   :  { %v564_v44 = vadd.f32 %v563_v40, %v560_v36  ;;  %v570_v61 = vmul.f32 %v569_v30, %v1139_v0  ;;  %v573_v46 = vmul.f32 %v572_v43, %v1141_v1  ;;  %v1992_v10 = vadd.f32 %v550_v37, %v548_v25  ;;  %s2120_s0 = sld [smem:[#allocation2 + $0xa0]]  ;;  %s2150_s14 = sld [smem:[#allocation2 + $0xa3]] }
  0x8e   :  { %vm553_vm8 = vcmp.ge.f32.partialorder %v1961_v24, 0.0  ;;  %v579_v0 = vstv %s1892_s11  ;;  %v582_v1 = vstv %s1894_s12  ;;  %v595_v50 = vstv %s1915_s15  ;;  %s2135_s11 = sld [smem:[#allocation2 + $0xa1]]  ;;  %s2148_s12 = sld [smem:[#allocation2 + $0xa2]] }
  0x8f   :  { %v2009_v33 = vadd.f32 %v566_v42, %v564_v44  ;;  %v574_v32 = vadd.f32 %v573_v46, %v570_v61  ;;  %v580_v49 = vmul.f32 %v2011_v48, %v579_v0  ;;  %v583_v52 = vmul.f32 %v2014_v51, %v582_v1  ;;  %vm2107_vm6 = vmand %vm552_vm3, %vm553_vm8  ;;  %s2162_s15 = sld [smem:[#allocation2 + $0xa4]] }
  0x90   :  { %vm555_vm9 = vcmp.ge.f32.partialorder %v1992_v10, 0.0  ;;  %v598_v53 = vstv %s1917_s16  ;;  %v596_v58 = vmul.f32 %v2011_v48, %v595_v50  ;;  %v602_v18 = vstv %s1934_s17  ;;  %vm2129_vm3 = vmor %vm485_vm0, %vm2092_vm14  ;;  %s2166_s16 = sld [smem:[#allocation2 + $0xa5]]  ;;  %s2168_s17 = sld [smem:[#allocation2 + $0xa6]] }
  0x91   :  { %v577_v55 = vadd.f32 %v576_v47, %v574_v32  ;;  %v584_v56 = vadd.f32 %v583_v52, %v580_v49  ;;  %vm588_vm2 = vcmp.ge.f32.partialorder %v2009_v33, 0.0  ;;  %v599_v63 = vmul.f32 %v2014_v51, %v598_v53  ;;  %vm2141_vm1 = vmand %vm2107_vm6, %vm555_vm9 }
  0x92   :  { %v605_v7 = vstv %s1948_s18  ;;  %v608_v57 = vstv %s1950_s13  ;;  %v612_v38 = vstv %s1966_s19  ;;  %v615_v5 = vstv %s1971_s1  ;;  %vm557_vm9 = vmor %vm2129_vm3, %vm2141_vm1  ;;  %s2177_s18 = sld [smem:[#allocation2 + $0xa7]]  ;;  %s2189_s13 = sld [smem:[#allocation2 + $0xa8]] }
  0x93   :  { %v2066_v2 = vadd.f32 %v586_v9, %v584_v56  ;;  %v606_v3 = vmul.f32 %v2011_v48, %v605_v7  ;;  %v609_v4 = vmul.f32 %v2014_v51, %v608_v57  ;;  %vm589_vm10 = vcmp.ge.f32.partialorder %v577_v55, 0.0  ;;  %s2191_s19 = sld [smem:[#allocation2 + $0xa9]]  ;;  %s2201_s1 = sld [smem:[#allocation2 + $0xaa]] }
  0x94   :  { %v600_v39 = vadd.f32 %v599_v63, %v596_v58  ;;  %v618_v28 = vstv %s1973_s20  ;;  %v616_v29 = vmul.f32 %v2011_v48, %v615_v5  ;;  %v622_v12 = vstv %s1982_s21  ;;  %vm2155_vm8 = vmand %vm588_vm2, %vm589_vm10  ;;  %s2206_s20 = sld [smem:[#allocation2 + $0xab]]  ;;  %s2208_s21 = sld [smem:[#allocation2 + $0xac]] }
  0x95   :  { %v610_v27 = vadd.f32 %v609_v4, %v606_v3  ;;  %v619_v11 = vmul.f32 %v2014_v51, %v618_v28  ;;  %vm591_vm5 = vcmp.ge.f32.partialorder %v2066_v2, 0.0  ;;  %v631_v15 = vstv %s1997_s8  ;;  %s2223_s8 = sld [smem:[#allocation2 + $0xad]] }
  0x96   :  { %v603_v14 = vadd.f32 %v602_v18, %v600_v39  ;;  %v634_v16 = vstv %s1999_s10  ;;  %v632_v17 = vmul.f32 %v2011_v48, %v631_v15  ;;  %v638_v20 = vstv %s2017_s22  ;;  %vm2183_vm4 = vmand %vm2155_vm8, %vm591_vm5  ;;  %s2235_s10 = sld [smem:[#allocation2 + $0xae]]  ;;  %s2237_s22 = sld [smem:[#allocation2 + $0xaf]] }
  0x97   :  { %v613_v26 = vadd.f32 %v612_v38, %v610_v27  ;;  %v620_v6 = vadd.f32 %v619_v11, %v616_v29  ;;  %v635_v35 = vmul.f32 %v2014_v51, %v634_v16  ;;  %v641_v21 = vstv %s2023_s23  ;;  %vm2217_vm10 = vmor %vm557_vm9, %vm2183_vm4  ;;  %s2248_s23 = sld [smem:[#allocation2 + $0xb0]] }
  0x98   :  { %vm624_vm15 = vcmp.ge.f32.partialorder %v603_v14, 0.0  ;;  %v644_v60 = vstv %s2025_s24  ;;  %v642_v22 = vmul.f32 %v2011_v48, %v641_v21  ;;  %v648_v23 = vstv %s2040_s25  ;;  %s2252_s24 = sld [smem:[#allocation2 + $0xb1]]  ;;  %s2254_s25 = sld [smem:[#allocation2 + $0xb2]] }
  0x99   :  { %v623_v31 = vadd.f32 %v622_v12, %v620_v6  ;;  %v636_v37 = vadd.f32 %v635_v35, %v632_v17  ;;  %vm625_vm11 = vcmp.ge.f32.partialorder %v613_v26, 0.0  ;;  %v645_v24 = vmul.f32 %v2014_v51, %v644_v60 }
  0x9a   :  { %v651_v36 = vstv %s2054_s26  ;;  %v654_v40 = vstv %s2056_s27  ;;  %v658_v44 = vstv %s2071_s29  ;;  %v667_v46 = vstv %s2075_s30  ;;  %vm2195_vm2 = vmand %vm624_vm15, %vm625_vm11  ;;  %s2272_s26 = sld [smem:[#allocation2 + $0xb3]] }
  0x9b   :  { %v639_v25 = vadd.f32 %v638_v20, %v636_v37  ;;  %v652_v30 = vmul.f32 %v2011_v48, %v651_v36  ;;  %v655_v43 = vmul.f32 %v2014_v51, %v654_v40  ;;  %vm627_vm7 = vcmp.ge.f32.partialorder %v623_v31, 0.0 }
  0x9c   :  { %v646_v61 = vadd.f32 %v645_v24, %v642_v22  ;;  %v670_v47 = vstv %s2077_s5  ;;  %v668_v10 = vmul.f32 %v2011_v48, %v667_v46  ;;  %v674_v1 = vstv %s2086_s2  ;;  %vm2228_vm0 = vmand %vm2195_vm2, %vm627_vm7 }
  0x9d   :  { %v656_v41 = vadd.f32 %v655_v43, %v652_v30  ;;  %v671_v0 = vmul.f32 %v2014_v51, %v670_v47  ;;  %vm660_vm12 = vcmp.ge.f32.partialorder %v639_v25, 0.0  ;;  %v677_v32 = vstv %s2099_s28  ;;  %vm629_vm15 = vmor %vm2217_vm10, %vm2228_vm0 }
  0x9e   :  { %v649_v33 = vadd.f32 %v648_v23, %v646_v61  ;;  %v680_v49 = vstv %s2101_s6  ;;  %v678_v53 = vmul.f32 %v2011_v48, %v677_v32  ;;  %v684_v55 = vstv %s2113_s7 }
  0x9f   :  { %v659_v9 = vadd.f32 %v658_v44, %v656_v41  ;;  %v672_v50 = vadd.f32 %v671_v0, %v668_v10  ;;  %v681_v54 = vmul.f32 %v2014_v51, %v680_v49  ;;  %v687_v56 = vstv %s2118_s9 }
  0xa0   :  { %vm661_vm13 = vcmp.ge.f32.partialorder %v649_v33, 0.0  ;;  %v690_v58 = vstv %s2120_s0  ;;  %v688_v7 = vmul.f32 %v2011_v48, %v687_v56  ;;  %v694_v57 = vstv %s2135_s11 }
  0xa1   :  { %v675_v62 = vadd.f32 %v674_v1, %v672_v50  ;;  %v682_v63 = vadd.f32 %v681_v54, %v678_v53  ;;  %vm663_vm14 = vcmp.ge.f32.partialorder %v659_v9, 0.0  ;;  %v691_v2 = vmul.f32 %v2014_v51, %v690_v58  ;;  %vm2241_vm5 = vmand %vm660_vm12, %vm661_vm13  ;;  %v776_v50 = vld [vmem:[%s2330_s3] sm:$0xff]  ;;  %s1049_s3 = scalar_lea.hbm %s2331_s4, 16 }
  0xa2   :  { %v703_v3 = vstv %s2148_s12  ;;  %v706_v4 = vstv %s2150_s14  ;;  %v710_v27 = vstv %s2162_s15  ;;  %v713_v11 = vstv %s2166_s16  ;;  %vm2265_vm1 = vmand %vm2241_vm5, %vm663_vm14  ;;  %p1050_p5 = scmp.ne.s32.totalorder %s2331_s4, %s1049_s3  ;;  %p1053_p6 = scmp.lt.u32.totalorder %s1049_s3, %s2331_s4 }
  0xa3   :  { %v685_v39 = vadd.f32 %v684_v55, %v682_v63  ;;  %v704_v5 = vmul.f32 %v2011_v48, %v703_v3  ;;  %v707_v28 = vmul.f32 %v2014_v51, %v706_v4  ;;  %v692_v29 = vadd.f32 %v691_v2, %v688_v7  ;;  %vm2287_vm7 = vmor %vm629_vm15, %vm2265_vm1 }
  0xa4   :  { %vm696_vm6 = vcmp.ge.f32.partialorder %v675_v62, 0.0  ;;  %v716_v12 = vstv %s2168_s17  ;;  %v714_v14 = vmul.f32 %v2011_v48, %v713_v11  ;;  %v720_v26 = vstv %s2177_s18  ;;  %p1055_p7 = pnand %p1053_p6, %p1050_p5 }
  0xa5   :  { %vm697_vm3 = vcmp.ge.f32.partialorder %v685_v39, 0.0  ;;  %v708_v59 = vadd.f32 %v707_v28, %v704_v5  ;;  %v717_v15 = vmul.f32 %v2014_v51, %v716_v12  ;;  %v695_v13 = vadd.f32 %v694_v57, %v692_v29 }
  0xa6   :  { %v723_v6 = vstv %s2189_s13  ;;  %v726_v17 = vstv %s2191_s19  ;;  %vm698_vm11 = vmand %vm696_vm6, %vm697_vm3  ;;  %v730_v19 = vstv %s2201_s1  ;;  %v739_v31 = vstv %s2206_s20 }
  0xa7   :  { %v711_v35 = vadd.f32 %v710_v27, %v708_v59  ;;  %v718_v20 = vadd.f32 %v717_v15, %v714_v14  ;;  %v724_v21 = vmul.f32 %v2011_v48, %v723_v6  ;;  %v727_v60 = vmul.f32 %v2014_v51, %v726_v17 }
  0xa8   :  { %vm699_vm8 = vcmp.ge.f32.partialorder %v695_v13, 0.0  ;;  %v742_v37 = vstv %s2208_s21  ;;  %v740_v24 = vmul.f32 %v2011_v48, %v739_v31  ;;  %v746_v42 = vstv %s2223_s8 }
  0xa9   :  { %v721_v23 = vadd.f32 %v720_v26, %v718_v20  ;;  %v728_v8 = vadd.f32 %v727_v60, %v724_v21  ;;  %vm732_vm9 = vcmp.ge.f32.partialorder %v711_v35, 0.0  ;;  %vm2292_vm4 = vmand %vm698_vm11, %vm699_vm8  ;;  %v743_v40 = vmul.f32 %v2014_v51, %v742_v37 }
  0xaa   :  { %v749_v25 = vstv %s2235_s10  ;;  %v752_v30 = vstv %s2237_s22  ;;  %v756_v47 = vstv %s2248_s23  ;;  %v759_v41 = vstv %s2252_s24  ;;  %vm701_vm13 = vmor %vm2287_vm7, %vm2292_vm4 }
  0xab   :  { %v731_v43 = vadd.f32 %v730_v19, %v728_v8  ;;  %vm733_vm12 = vcmp.ge.f32.partialorder %v721_v23, 0.0  ;;  %v750_v44 = vmul.f32 %v2011_v48, %v749_v25  ;;  %v753_v61 = vmul.f32 %v2014_v51, %v752_v30 }
  0xac   :  { %vm734_vm2 = vmand %vm732_vm9, %vm733_vm12  ;;  %v744_v46 = vadd.f32 %v743_v40, %v740_v24  ;;  %v762_v10 = vstv %s2254_s25  ;;  %v760_v1 = vmul.f32 %v2011_v48, %v759_v41  ;;  %v766_v32 = vstv %s2272_s26 }
  0xad   :  { %vm735_vm10 = vcmp.ge.f32.partialorder %v731_v43, 0.0  ;;  %v754_v0 = vadd.f32 %v753_v61, %v750_v44  ;;  %v763_v45 = vmul.f32 %v2014_v51, %v762_v10  ;;  %v1070_v48 = vmov 0.0  }
  0xae   :  { %vm736_vm0 = vmand %vm734_vm2, %vm735_vm10  ;;  %v747_v33 = vadd.f32 %v746_v42, %v744_v46 }
  0xaf   :  { %v757_v49 = vadd.f32 %v756_v47, %v754_v0  ;;  %v764_v52 = vadd.f32 %v763_v45, %v760_v1  ;;  %vm737_vm5 = vmor %vm701_vm13, %vm736_vm0 }
  0xb0   :  { %vm768_vm14 = vcmp.ge.f32.partialorder %v747_v33, 0.0 }
  0xb1   :  { %v767_v9 = vadd.f32 %v766_v32, %v764_v52  ;;  %vm769_vm6 = vcmp.ge.f32.partialorder %v757_v49, 0.0 }
  0xb2   :  { %vm770_vm15 = vmand %vm768_vm14, %vm769_vm6 }
  0xb3   :  { %vm771_vm3 = vcmp.ge.f32.partialorder %v767_v9, 0.0 }
  0xb4   :  { %vm772_vm1 = vmand %vm770_vm15, %vm771_vm3 }
  0xb5   :  { %vm773_vm11 = vmor %vm737_vm5, %vm772_vm1 }
  0xb6   :  { %v985_v53 = vsel %vm773_vm11, 1.0, %v1070_v48 }
  0xb7   :  { %v777_v51 = vsub.f32 %v985_v53, %v776_v50 }
  0xb9   :  { %v778_v54 = vmul.f32 %v777_v51, %v777_v51 }
  0xbb   :  { %779 = vadd.xlane.f32.xlu0 %v778_v54 }
 0x148   :  { %v780_v55 = vpop.xlane.xlu0 %779 }
 0x149   :  { %v781_v56 = vrot.slane %v780_v55, 4 }
 0x14b   :  { %v782_v58 = vadd.f32 %v781_v56, %v780_v55 }
 0x14d   :  { %v783_v18 = vrot.slane %v782_v58, 2 }
 0x14f   :  { %v784_v62 = vadd.f32 %v783_v18, %v782_v58 }
 0x151   :  { %v785_v63 = vrot.slane %v784_v62, 1 }
 0x153   :  { %v786_v7 = vadd.f32 %v785_v63, %v784_v62 }
 0x155   :  { %986 = vpush %v786_v7 }
 0x186   :  { %s987_s30 = spop %986 }
 0x187   :  { %789 = sst [smem:[#allocation9]] %s987_s30 }
 0x188   :  { %1058 = shalt.err (!%p1055_p7)
}
 0x189   :  { %s1071_s0 = smov [#allocation9]  }
 0x18a   :  { %797 = dma.smem_to_hbm %s1071_s0, 16, %s2331_s4, [#allocation5]  }
 0x18b   :  { %1065 = dma.done.wait [#allocation5], 16  }
 0x18c   :  { %1066 = vsyncadd [#allocation5], 4294967280 }
 0x18d   :  { %801 = sfence }
 0x18e   :  { %802 = vsyncpa [#allocation3], 1 }
 0x18f   :  { %803 = vsyncpa [#allocation8], 1 }
 0x190   :  { %804 = vsyncpa [#allocation4], 1 }
 0x191   :  { %805 = vsyncpa [#allocation5], 1 }

</bundles_post_ra>
